<compile_context>
chip_gen: v6e
topology: v6e:2x2x1
jax: 0.10.0
libtpu: 0.0.40
codegen_flags: <defaults>
</compile_context>

<pallas_src>
import jax
import jax.numpy as jnp
from jax import lax
from jax.experimental import pallas as pl
from jax.experimental.pallas import tpu as pltpu


def _round_up(x, m):
    return (x + m - 1) // m * m


def _make_encoder_prenet_kernel(T, Tp, K, halo):
    """T: real seq len, Tp: padded seq len (mult of 8), K: conv taps, halo=(K-1)//2."""

    def _conv_relu(tap, w_ref, b_ref):
        # tap(k) -> (Tp, Cin) slice of the halo-padded input for conv tap k.
        wdt = w_ref.dtype
        acc = jnp.dot(tap(0).astype(wdt), w_ref[0],
                      preferred_element_type=jnp.float32)
        for k in range(1, K):
            acc = acc + jnp.dot(tap(k).astype(wdt), w_ref[k],
                                preferred_element_type=jnp.float32)
        # f32 epilogue (bias already has BN folded in), ReLU.
        return jnp.maximum(acc + b_ref[...].astype(jnp.float32), 0.0)

    def _mask_tail(h):
        # Rows >= T are padding artifacts; they must be zero before they are
        # used as the next conv's zero-padding neighbourhood.
        if Tp > T:
            rows = lax.broadcasted_iota(jnp.int32, h.shape, 0)
            h = jnp.where(rows < T, h, 0.0)
        return h

    def kernel(x_ref, w1_ref, b1_ref, w2_ref, b2_ref, w3_ref, b3_ref,
               wfc_ref, bfc_ref, o_ref, hpad_ref):
        # x_ref:    (1, Tp + 2*halo, Ep)   wrapper pre-padded (time halo + lanes)
        # w*_ref:   (K, Cin_p, Hp)         BN folded, (tap, in, out) layout
        # b*_ref:   (1, Hp)
        # wfc_ref:  (Hp, Hp), bfc_ref: (1, Hp)
        # o_ref:    (1, Tp, Hp)
        # hpad_ref: VMEM scratch (Tp + 2*halo, Hp) for re-padding between convs.

        # Zero scratch every grid step (no pl.when(pid==0): each TensorCore on
        # v7x gets its own scratch, so a one-time init would miss a core).
        hpad_ref[...] = jnp.zeros_like(hpad_ref)

        x0 = x_ref[0]                                     # (Tp + 2*halo, Ep)
        h = _conv_relu(lambda k: x0[k:k + Tp, :], w1_ref, b1_ref)   # (Tp, Hp) f32

        for w_ref, b_ref in ((w2_ref, b2_ref), (w3_ref, b3_ref)):
            hpad_ref[halo:halo + Tp, :] = _mask_tail(h)
            hp = hpad_ref[...]
            h = _conv_relu(lambda k: hp[k:k + Tp, :], w_ref, b_ref)

        y = jnp.dot(h.astype(wfc_ref.dtype), wfc_ref[...],
                    preferred_element_type=jnp.float32)
        y = y + bfc_ref[...].astype(jnp.float32)
        o_ref[0] = y.astype(o_ref.dtype)

    return kernel


def encoder_prenet(x, params, *, eps=1e-5, lane=128):
    """x: (B, T, E) float array.

    params: PyTorch-convention weights:
      conv{i}_w (H, Cin, K), conv{i}_b (H,), bn{i}_{gamma,beta,mean,var} (H,),
      fc_w (H, H) [out, in], fc_b (H,).
    Returns (B, T, H).
    """
    B, T, E = x.shape
    H, _, K = params["conv1_w"].shape
    halo = (K - 1) // 2

    Tp = _round_up(T, 8)           # sublane-aligned time
    Ep = _round_up(E, lane)        # lane-dense channels
    Hp = _round_up(H, lane)

    def fold(i, cin, cin_p):
        w = params[f"conv{i}_w"]                            # (H, cin, K)
        b = params[f"conv{i}_b"]
        s = params[f"bn{i}_gamma"] / jnp.sqrt(params[f"bn{i}_var"] + eps)
        wf = w * s[:, None, None]                           # BN scale folded
        bf = (b - params[f"bn{i}_mean"]) * s + params[f"bn{i}_beta"]
        wk = jnp.transpose(wf, (2, 1, 0))                   # (K, cin, H)
        wk = jnp.pad(wk, ((0, 0), (0, cin_p - cin), (0, Hp - H)))
        bf = jnp.pad(bf, (0, Hp - H)).reshape(1, Hp)
        return wk.astype(x.dtype), bf.astype(x.dtype)

    w1, b1 = fold(1, E, Ep)
    w2, b2 = fold(2, H, Hp)
    w3, b3 = fold(3, H, Hp)

    wfc = jnp.pad(params["fc_w"].T, ((0, Hp - H), (0, Hp - H))).astype(x.dtype)
    bfc = jnp.pad(params["fc_b"], (0, Hp - H)).reshape(1, Hp).astype(x.dtype)

    # Pre-pad: time halo (conv zero padding) + time round-up + channel lanes.
    xpad = jnp.pad(x, ((0, 0), (halo, Tp - T + halo), (0, Ep - E)))
    Tin = Tp + 2 * halo

    kernel = _make_encoder_prenet_kernel(T, Tp, K, halo)

    out = pl.pallas_call(
        kernel,
        out_shape=jax.ShapeDtypeStruct((B, Tp, Hp), x.dtype),
        grid_spec=pltpu.PrefetchScalarGridSpec(
            num_scalar_prefetch=0,
            grid=(B,),
            in_specs=[
                pl.BlockSpec((1, Tin, Ep), lambda b: (b, 0, 0)),   # x tile
                pl.BlockSpec((K, Ep, Hp),  lambda b: (0, 0, 0)),   # W1 (resident)
                pl.BlockSpec((1, Hp),      lambda b: (0, 0)),      # b1
                pl.BlockSpec((K, Hp, Hp),  lambda b: (0, 0, 0)),   # W2
                pl.BlockSpec((1, Hp),      lambda b: (0, 0)),      # b2
                pl.BlockSpec((K, Hp, Hp),  lambda b: (0, 0, 0)),   # W3
                pl.BlockSpec((1, Hp),      lambda b: (0, 0)),      # b3
                pl.BlockSpec((Hp, Hp),     lambda b: (0, 0)),      # W_fc
                pl.BlockSpec((1, Hp),      lambda b: (0, 0)),      # b_fc
            ],
            out_specs=pl.BlockSpec((1, Tp, Hp), lambda b: (b, 0, 0)),
            scratch_shapes=[pltpu.VMEM((Tin, Hp), jnp.float32)],
        ),
        compiler_params=pltpu.CompilerParams(
            dimension_semantics=("parallel",),
            vmem_limit_bytes=32 * 1024 * 1024),
    )(xpad, w1, b1, w2, b2, w3, b3, wfc, bfc)

    return out[:, :T, :H]


def _ref_forward(x, p, eps=1e-5):
    """Pure-JAX reference (eval-mode BN + identity dropout), HIGHEST precision."""
    prec = lax.Precision.HIGHEST
    h = x
    for i in (1, 2, 3):
        h = lax.conv_general_dilated(
            h, p[f"conv{i}_w"], window_strides=(1,), padding=[(2, 2)],
            dimension_numbers=("NWC", "OIW", "NWC"), precision=prec)
        h = h + p[f"conv{i}_b"][None, None, :]
        h = (h - p[f"bn{i}_mean"]) / jnp.sqrt(p[f"bn{i}_var"] + eps)
        h = h * p[f"bn{i}_gamma"] + p[f"bn{i}_beta"]
        h = jnp.maximum(h, 0.0)
    return jnp.dot(h, p["fc_w"].T, precision=prec) + p["fc_b"]


def _init_params(key, embed_dims, hidden_dims, K=5):
    keys = iter(jax.random.split(key, 24))
    nrm = lambda shape, s: s * jax.random.normal(next(keys), shape, jnp.float32)
    p = {}
    cin = embed_dims
    for i in (1, 2, 3):
        p[f"conv{i}_w"] = nrm((hidden_dims, cin, K), 0.1)
        p[f"conv{i}_b"] = nrm((hidden_dims,), 0.02)
        p[f"bn{i}_gamma"] = 1.0 + nrm((hidden_dims,), 0.1)
        p[f"bn{i}_beta"] = nrm((hidden_dims,), 0.05)
        p[f"bn{i}_mean"] = nrm((hidden_dims,), 0.1)
        p[f"bn{i}_var"] = 0.5 + jax.random.uniform(next(keys), (hidden_dims,),
                                                   jnp.float32)
        cin = hidden_dims
    p["fc_w"] = nrm((hidden_dims, hidden_dims), 0.1)
    p["fc_b"] = nrm((hidden_dims,), 0.02)
    return p


if __name__ == "__main__":
    batch, seq = 4, 20
    embed_dims, hidden_dims = 48, 64
    # dropout = 0.5  # identity in eval mode
    eps = 1e-5

    key = jax.random.PRNGKey(0)
    k_x, k_p = jax.random.split(key)
    x = jax.random.normal(k_x, (batch, seq, embed_dims), dtype=jnp.float32)
    params = _init_params(k_p, embed_dims, hidden_dims)

    out = encoder_prenet(x, params, eps=eps)
    out = jax.block_until_ready(out)

    ref = _ref_forward(x, params, eps=eps)
    assert out.shape == (batch, seq, hidden_dims)
    # Loose-ish tolerance: robust across MXU f32 precision modes; structural
    # bugs (wrong tap shift, missing bias/BN fold) produce O(1) errors.
    assert jnp.allclose(out, ref, atol=2e-2, rtol=2e-2), (
        f"max abs err {jnp.max(jnp.abs(out - ref))}")

    print("KERNEL_OK")
</pallas_src>

<mosaic_0001>
module attributes {stable_mosaic.version = 11 : i64} {
  func.func @kernel(%arg0: i32, %arg1: memref<1x28x128xf32, #tpu.memory_space<vmem>>, %arg2: memref<5x128x128xf32, #tpu.memory_space<vmem>>, %arg3: memref<1x128xf32, #tpu.memory_space<vmem>>, %arg4: memref<5x128x128xf32, #tpu.memory_space<vmem>>, %arg5: memref<1x128xf32, #tpu.memory_space<vmem>>, %arg6: memref<5x128x128xf32, #tpu.memory_space<vmem>>, %arg7: memref<1x128xf32, #tpu.memory_space<vmem>>, %arg8: memref<128x128xf32, #tpu.memory_space<vmem>>, %arg9: memref<1x128xf32, #tpu.memory_space<vmem>>, %arg10: memref<1x24x128xf32, #tpu.memory_space<vmem>>, %arg11: memref<28x128xf32, #tpu.memory_space<vmem>>) attributes {dimension_semantics = [#tpu.dimension_semantics<parallel>], iteration_bounds = array<i64: 4>, scalar_prefetch = 0 : i64, scratch_operands = 1 : i64, tpu.core_type = #tpu.core_type<tc>, window_params = [{transform_indices = @transform_0, window_bounds = array<i64: 1, 28, 128>}, {pipeline_mode = #tpu.pipeline_mode<synchronous>, transform_indices = @transform_1, window_bounds = array<i64: 5, 128, 128>}, {pipeline_mode = #tpu.pipeline_mode<synchronous>, transform_indices = @transform_2, window_bounds = array<i64: 1, 128>}, {pipeline_mode = #tpu.pipeline_mode<synchronous>, transform_indices = @transform_3, window_bounds = array<i64: 5, 128, 128>}, {pipeline_mode = #tpu.pipeline_mode<synchronous>, transform_indices = @transform_4, window_bounds = array<i64: 1, 128>}, {pipeline_mode = #tpu.pipeline_mode<synchronous>, transform_indices = @transform_5, window_bounds = array<i64: 5, 128, 128>}, {pipeline_mode = #tpu.pipeline_mode<synchronous>, transform_indices = @transform_6, window_bounds = array<i64: 1, 128>}, {pipeline_mode = #tpu.pipeline_mode<synchronous>, transform_indices = @transform_7, window_bounds = array<i64: 128, 128>}, {pipeline_mode = #tpu.pipeline_mode<synchronous>, transform_indices = @transform_8, window_bounds = array<i64: 1, 128>}, {transform_indices = @transform_9, window_bounds = array<i64: 1, 24, 128>}]} {
    %cst = arith.constant 0.000000e+00 : f32
    %0 = vector.broadcast %cst : f32 to vector<28x128xf32>
    %c0 = arith.constant 0 : index
    %c0_0 = arith.constant 0 : index
    %1 = vector.load %arg11[%c0, %c0_0] : memref<28x128xf32, #tpu.memory_space<vmem>>, vector<28x128xf32>
    tpu.vector_store %arg11[%c0, %c0_0], %0 {strides = array<i32>} : memref<28x128xf32, #tpu.memory_space<vmem>>, vector<28x128xf32>,
    %c0_1 = arith.constant 0 : index
    %c0_2 = arith.constant 0 : index
    %c0_3 = arith.constant 0 : index
    %2 = vector.load %arg1[%c0_1, %c0_2, %c0_3] : memref<1x28x128xf32, #tpu.memory_space<vmem>>, vector<1x28x128xf32>
    %3 = vector.shape_cast %2 : vector<1x28x128xf32> to vector<28x128xf32>
    %4 = vector.extract_strided_slice %3 {offsets = [0, 0], sizes = [24, 128], strides = [1, 1]} : vector<28x128xf32> to vector<24x128xf32>
    %c0_4 = arith.constant 0 : index
    %c0_5 = arith.constant 0 : index
    %c0_6 = arith.constant 0 : index
    %5 = vector.load %arg2[%c0_4, %c0_5, %c0_6] : memref<5x128x128xf32, #tpu.memory_space<vmem>>, vector<1x128x128xf32>
    %6 = vector.shape_cast %5 : vector<1x128x128xf32> to vector<128x128xf32>
    %cst_7 = arith.constant dense<0.000000e+00> : vector<24x128xf32>
    %7 = tpu.matmul %4, %6, %cst_7 {dimension_numbers = #tpu.dot_dimension_numbers<[1], [0], [0], [1], [0, 0, 1, 1], [], []>} : vector<24x128xf32>, vector<128x128xf32>, vector<24x128xf32> -> vector<24x128xf32>
    %8 = vector.extract_strided_slice %3 {offsets = [1, 0], sizes = [24, 128], strides = [1, 1]} : vector<28x128xf32> to vector<24x128xf32>
    %c1 = arith.constant 1 : index
    %c0_8 = arith.constant 0 : index
    %c0_9 = arith.constant 0 : index
    %9 = vector.load %arg2[%c1, %c0_8, %c0_9] : memref<5x128x128xf32, #tpu.memory_space<vmem>>, vector<1x128x128xf32>
    %10 = vector.shape_cast %9 : vector<1x128x128xf32> to vector<128x128xf32>
    %cst_10 = arith.constant dense<0.000000e+00> : vector<24x128xf32>
    %11 = tpu.matmul %8, %10, %cst_10 {dimension_numbers = #tpu.dot_dimension_numbers<[1], [0], [0], [1], [0, 0, 1, 1], [], []>} : vector<24x128xf32>, vector<128x128xf32>, vector<24x128xf32> -> vector<24x128xf32>
    %12 = arith.addf %7, %11 : vector<24x128xf32>
    %13 = vector.extract_strided_slice %3 {offsets = [2, 0], sizes = [24, 128], strides = [1, 1]} : vector<28x128xf32> to vector<24x128xf32>
    %c2 = arith.constant 2 : index
    %c0_11 = arith.constant 0 : index
    %c0_12 = arith.constant 0 : index
    %14 = vector.load %arg2[%c2, %c0_11, %c0_12] : memref<5x128x128xf32, #tpu.memory_space<vmem>>, vector<1x128x128xf32>
    %15 = vector.shape_cast %14 : vector<1x128x128xf32> to vector<128x128xf32>
    %cst_13 = arith.constant dense<0.000000e+00> : vector<24x128xf32>
    %16 = tpu.matmul %13, %15, %cst_13 {dimension_numbers = #tpu.dot_dimension_numbers<[1], [0], [0], [1], [0, 0, 1, 1], [], []>} : vector<24x128xf32>, vector<128x128xf32>, vector<24x128xf32> -> vector<24x128xf32>
    %17 = arith.addf %12, %16 : vector<24x128xf32>
    %18 = vector.extract_strided_slice %3 {offsets = [3, 0], sizes = [24, 128], strides = [1, 1]} : vector<28x128xf32> to vector<24x128xf32>
    %c3 = arith.constant 3 : index
    %c0_14 = arith.constant 0 : index
    %c0_15 = arith.constant 0 : index
    %19 = vector.load %arg2[%c3, %c0_14, %c0_15] : memref<5x128x128xf32, #tpu.memory_space<vmem>>, vector<1x128x128xf32>
    %20 = vector.shape_cast %19 : vector<1x128x128xf32> to vector<128x128xf32>
    %cst_16 = arith.constant dense<0.000000e+00> : vector<24x128xf32>
    %21 = tpu.matmul %18, %20, %cst_16 {dimension_numbers = #tpu.dot_dimension_numbers<[1], [0], [0], [1], [0, 0, 1, 1], [], []>} : vector<24x128xf32>, vector<128x128xf32>, vector<24x128xf32> -> vector<24x128xf32>
    %22 = arith.addf %17, %21 : vector<24x128xf32>
    %23 = vector.extract_strided_slice %3 {offsets = [4, 0], sizes = [24, 128], strides = [1, 1]} : vector<28x128xf32> to vector<24x128xf32>
    %c4 = arith.constant 4 : index
    %c0_17 = arith.constant 0 : index
    %c0_18 = arith.constant 0 : index
    %24 = vector.load %arg2[%c4, %c0_17, %c0_18] : memref<5x128x128xf32, #tpu.memory_space<vmem>>, vector<1x128x128xf32>
    %25 = vector.shape_cast %24 : vector<1x128x128xf32> to vector<128x128xf32>
    %cst_19 = arith.constant dense<0.000000e+00> : vector<24x128xf32>
    %26 = tpu.matmul %23, %25, %cst_19 {dimension_numbers = #tpu.dot_dimension_numbers<[1], [0], [0], [1], [0, 0, 1, 1], [], []>} : vector<24x128xf32>, vector<128x128xf32>, vector<24x128xf32> -> vector<24x128xf32>
    %27 = arith.addf %22, %26 : vector<24x128xf32>
    %c0_20 = arith.constant 0 : index
    %c0_21 = arith.constant 0 : index
    %28 = vector.load %arg3[%c0_20, %c0_21] : memref<1x128xf32, #tpu.memory_space<vmem>>, vector<1x128xf32>
    %29 = vector.broadcast %28 : vector<1x128xf32> to vector<24x128xf32>
    %30 = arith.addf %27, %29 : vector<24x128xf32>
    %cst_22 = arith.constant 0.000000e+00 : f32
    %31 = vector.broadcast %cst_22 : f32 to vector<24x128xf32>
    %32 = arith.maximumf %30, %31 : vector<24x128xf32>
    %33 = tpu.iota {dimensions = array<i32: 0>} : vector<24x128xi32>
    %c20_i32 = arith.constant 20 : i32
    %34 = vector.broadcast %c20_i32 : i32 to vector<24x128xi32>
    %35 = arith.cmpi slt, %33, %34 : vector<24x128xi32>
    %cst_23 = arith.constant 0.000000e+00 : f32
    %36 = vector.broadcast %cst_23 : f32 to vector<24x128xf32>
    %37 = arith.select %35, %32, %36 : vector<24x128xi1>, vector<24x128xf32>
    %c2_24 = arith.constant 2 : index
    %c0_25 = arith.constant 0 : index
    %38 = vector.load %arg11[%c2_24, %c0_25] : memref<28x128xf32, #tpu.memory_space<vmem>>, vector<24x128xf32>
    tpu.vector_store %arg11[%c2_24, %c0_25], %37 {strides = array<i32>} : memref<28x128xf32, #tpu.memory_space<vmem>>, vector<24x128xf32>,
    %c0_26 = arith.constant 0 : index
    %c0_27 = arith.constant 0 : index
    %39 = vector.load %arg11[%c0_26, %c0_27] : memref<28x128xf32, #tpu.memory_space<vmem>>, vector<28x128xf32>
    %40 = vector.extract_strided_slice %39 {offsets = [0, 0], sizes = [24, 128], strides = [1, 1]} : vector<28x128xf32> to vector<24x128xf32>
    %c0_28 = arith.constant 0 : index
    %c0_29 = arith.constant 0 : index
    %c0_30 = arith.constant 0 : index
    %41 = vector.load %arg4[%c0_28, %c0_29, %c0_30] : memref<5x128x128xf32, #tpu.memory_space<vmem>>, vector<1x128x128xf32>
    %42 = vector.shape_cast %41 : vector<1x128x128xf32> to vector<128x128xf32>
    %cst_31 = arith.constant dense<0.000000e+00> : vector<24x128xf32>
    %43 = tpu.matmul %40, %42, %cst_31 {dimension_numbers = #tpu.dot_dimension_numbers<[1], [0], [0], [1], [0, 0, 1, 1], [], []>} : vector<24x128xf32>, vector<128x128xf32>, vector<24x128xf32> -> vector<24x128xf32>
    %44 = vector.extract_strided_slice %39 {offsets = [1, 0], sizes = [24, 128], strides = [1, 1]} : vector<28x128xf32> to vector<24x128xf32>
    %c1_32 = arith.constant 1 : index
    %c0_33 = arith.constant 0 : index
    %c0_34 = arith.constant 0 : index
    %45 = vector.load %arg4[%c1_32, %c0_33, %c0_34] : memref<5x128x128xf32, #tpu.memory_space<vmem>>, vector<1x128x128xf32>
    %46 = vector.shape_cast %45 : vector<1x128x128xf32> to vector<128x128xf32>
    %cst_35 = arith.constant dense<0.000000e+00> : vector<24x128xf32>
    %47 = tpu.matmul %44, %46, %cst_35 {dimension_numbers = #tpu.dot_dimension_numbers<[1], [0], [0], [1], [0, 0, 1, 1], [], []>} : vector<24x128xf32>, vector<128x128xf32>, vector<24x128xf32> -> vector<24x128xf32>
    %48 = arith.addf %43, %47 : vector<24x128xf32>
    %49 = vector.extract_strided_slice %39 {offsets = [2, 0], sizes = [24, 128], strides = [1, 1]} : vector<28x128xf32> to vector<24x128xf32>
    %c2_36 = arith.constant 2 : index
    %c0_37 = arith.constant 0 : index
    %c0_38 = arith.constant 0 : index
    %50 = vector.load %arg4[%c2_36, %c0_37, %c0_38] : memref<5x128x128xf32, #tpu.memory_space<vmem>>, vector<1x128x128xf32>
    %51 = vector.shape_cast %50 : vector<1x128x128xf32> to vector<128x128xf32>
    %cst_39 = arith.constant dense<0.000000e+00> : vector<24x128xf32>
    %52 = tpu.matmul %49, %51, %cst_39 {dimension_numbers = #tpu.dot_dimension_numbers<[1], [0], [0], [1], [0, 0, 1, 1], [], []>} : vector<24x128xf32>, vector<128x128xf32>, vector<24x128xf32> -> vector<24x128xf32>
    %53 = arith.addf %48, %52 : vector<24x128xf32>
    %54 = vector.extract_strided_slice %39 {offsets = [3, 0], sizes = [24, 128], strides = [1, 1]} : vector<28x128xf32> to vector<24x128xf32>
    %c3_40 = arith.constant 3 : index
    %c0_41 = arith.constant 0 : index
    %c0_42 = arith.constant 0 : index
    %55 = vector.load %arg4[%c3_40, %c0_41, %c0_42] : memref<5x128x128xf32, #tpu.memory_space<vmem>>, vector<1x128x128xf32>
    %56 = vector.shape_cast %55 : vector<1x128x128xf32> to vector<128x128xf32>
    %cst_43 = arith.constant dense<0.000000e+00> : vector<24x128xf32>
    %57 = tpu.matmul %54, %56, %cst_43 {dimension_numbers = #tpu.dot_dimension_numbers<[1], [0], [0], [1], [0, 0, 1, 1], [], []>} : vector<24x128xf32>, vector<128x128xf32>, vector<24x128xf32> -> vector<24x128xf32>
    %58 = arith.addf %53, %57 : vector<24x128xf32>
    %59 = vector.extract_strided_slice %39 {offsets = [4, 0], sizes = [24, 128], strides = [1, 1]} : vector<28x128xf32> to vector<24x128xf32>
    %c4_44 = arith.constant 4 : index
    %c0_45 = arith.constant 0 : index
    %c0_46 = arith.constant 0 : index
    %60 = vector.load %arg4[%c4_44, %c0_45, %c0_46] : memref<5x128x128xf32, #tpu.memory_space<vmem>>, vector<1x128x128xf32>
    %61 = vector.shape_cast %60 : vector<1x128x128xf32> to vector<128x128xf32>
    %cst_47 = arith.constant dense<0.000000e+00> : vector<24x128xf32>
    %62 = tpu.matmul %59, %61, %cst_47 {dimension_numbers = #tpu.dot_dimension_numbers<[1], [0], [0], [1], [0, 0, 1, 1], [], []>} : vector<24x128xf32>, vector<128x128xf32>, vector<24x128xf32> -> vector<24x128xf32>
    %63 = arith.addf %58, %62 : vector<24x128xf32>
    %c0_48 = arith.constant 0 : index
    %c0_49 = arith.constant 0 : index
    %64 = vector.load %arg5[%c0_48, %c0_49] : memref<1x128xf32, #tpu.memory_space<vmem>>, vector<1x128xf32>
    %65 = vector.broadcast %64 : vector<1x128xf32> to vector<24x128xf32>
    %66 = arith.addf %63, %65 : vector<24x128xf32>
    %cst_50 = arith.constant 0.000000e+00 : f32
    %67 = vector.broadcast %cst_50 : f32 to vector<24x128xf32>
    %68 = arith.maximumf %66, %67 : vector<24x128xf32>
    %69 = tpu.iota {dimensions = array<i32: 0>} : vector<24x128xi32>
    %c20_i32_51 = arith.constant 20 : i32
    %70 = vector.broadcast %c20_i32_51 : i32 to vector<24x128xi32>
    %71 = arith.cmpi slt, %69, %70 : vector<24x128xi32>
    %cst_52 = arith.constant 0.000000e+00 : f32
    %72 = vector.broadcast %cst_52 : f32 to vector<24x128xf32>
    %73 = arith.select %71, %68, %72 : vector<24x128xi1>, vector<24x128xf32>
    %c2_53 = arith.constant 2 : index
    %c0_54 = arith.constant 0 : index
    %74 = vector.load %arg11[%c2_53, %c0_54] : memref<28x128xf32, #tpu.memory_space<vmem>>, vector<24x128xf32>
    tpu.vector_store %arg11[%c2_53, %c0_54], %73 {strides = array<i32>} : memref<28x128xf32, #tpu.memory_space<vmem>>, vector<24x128xf32>,
    %c0_55 = arith.constant 0 : index
    %c0_56 = arith.constant 0 : index
    %75 = vector.load %arg11[%c0_55, %c0_56] : memref<28x128xf32, #tpu.memory_space<vmem>>, vector<28x128xf32>
    %76 = vector.extract_strided_slice %75 {offsets = [0, 0], sizes = [24, 128], strides = [1, 1]} : vector<28x128xf32> to vector<24x128xf32>
    %c0_57 = arith.constant 0 : index
    %c0_58 = arith.constant 0 : index
    %c0_59 = arith.constant 0 : index
    %77 = vector.load %arg6[%c0_57, %c0_58, %c0_59] : memref<5x128x128xf32, #tpu.memory_space<vmem>>, vector<1x128x128xf32>
    %78 = vector.shape_cast %77 : vector<1x128x128xf32> to vector<128x128xf32>
    %cst_60 = arith.constant dense<0.000000e+00> : vector<24x128xf32>
    %79 = tpu.matmul %76, %78, %cst_60 {dimension_numbers = #tpu.dot_dimension_numbers<[1], [0], [0], [1], [0, 0, 1, 1], [], []>} : vector<24x128xf32>, vector<128x128xf32>, vector<24x128xf32> -> vector<24x128xf32>
    %80 = vector.extract_strided_slice %75 {offsets = [1, 0], sizes = [24, 128], strides = [1, 1]} : vector<28x128xf32> to vector<24x128xf32>
    %c1_61 = arith.constant 1 : index
    %c0_62 = arith.constant 0 : index
    %c0_63 = arith.constant 0 : index
    %81 = vector.load %arg6[%c1_61, %c0_62, %c0_63] : memref<5x128x128xf32, #tpu.memory_space<vmem>>, vector<1x128x128xf32>
    %82 = vector.shape_cast %81 : vector<1x128x128xf32> to vector<128x128xf32>
    %cst_64 = arith.constant dense<0.000000e+00> : vector<24x128xf32>
    %83 = tpu.matmul %80, %82, %cst_64 {dimension_numbers = #tpu.dot_dimension_numbers<[1], [0], [0], [1], [0, 0, 1, 1], [], []>} : vector<24x128xf32>, vector<128x128xf32>, vector<24x128xf32> -> vector<24x128xf32>
    %84 = arith.addf %79, %83 : vector<24x128xf32>
    %85 = vector.extract_strided_slice %75 {offsets = [2, 0], sizes = [24, 128], strides = [1, 1]} : vector<28x128xf32> to vector<24x128xf32>
    %c2_65 = arith.constant 2 : index
    %c0_66 = arith.constant 0 : index
    %c0_67 = arith.constant 0 : index
    %86 = vector.load %arg6[%c2_65, %c0_66, %c0_67] : memref<5x128x128xf32, #tpu.memory_space<vmem>>, vector<1x128x128xf32>
    %87 = vector.shape_cast %86 : vector<1x128x128xf32> to vector<128x128xf32>
    %cst_68 = arith.constant dense<0.000000e+00> : vector<24x128xf32>
    %88 = tpu.matmul %85, %87, %cst_68 {dimension_numbers = #tpu.dot_dimension_numbers<[1], [0], [0], [1], [0, 0, 1, 1], [], []>} : vector<24x128xf32>, vector<128x128xf32>, vector<24x128xf32> -> vector<24x128xf32>
    %89 = arith.addf %84, %88 : vector<24x128xf32>
    %90 = vector.extract_strided_slice %75 {offsets = [3, 0], sizes = [24, 128], strides = [1, 1]} : vector<28x128xf32> to vector<24x128xf32>
    %c3_69 = arith.constant 3 : index
    %c0_70 = arith.constant 0 : index
    %c0_71 = arith.constant 0 : index
    %91 = vector.load %arg6[%c3_69, %c0_70, %c0_71] : memref<5x128x128xf32, #tpu.memory_space<vmem>>, vector<1x128x128xf32>
    %92 = vector.shape_cast %91 : vector<1x128x128xf32> to vector<128x128xf32>
    %cst_72 = arith.constant dense<0.000000e+00> : vector<24x128xf32>
    %93 = tpu.matmul %90, %92, %cst_72 {dimension_numbers = #tpu.dot_dimension_numbers<[1], [0], [0], [1], [0, 0, 1, 1], [], []>} : vector<24x128xf32>, vector<128x128xf32>, vector<24x128xf32> -> vector<24x128xf32>
    %94 = arith.addf %89, %93 : vector<24x128xf32>
    %95 = vector.extract_strided_slice %75 {offsets = [4, 0], sizes = [24, 128], strides = [1, 1]} : vector<28x128xf32> to vector<24x128xf32>
    %c4_73 = arith.constant 4 : index
    %c0_74 = arith.constant 0 : index
    %c0_75 = arith.constant 0 : index
    %96 = vector.load %arg6[%c4_73, %c0_74, %c0_75] : memref<5x128x128xf32, #tpu.memory_space<vmem>>, vector<1x128x128xf32>
    %97 = vector.shape_cast %96 : vector<1x128x128xf32> to vector<128x128xf32>
    %cst_76 = arith.constant dense<0.000000e+00> : vector<24x128xf32>
    %98 = tpu.matmul %95, %97, %cst_76 {dimension_numbers = #tpu.dot_dimension_numbers<[1], [0], [0], [1], [0, 0, 1, 1], [], []>} : vector<24x128xf32>, vector<128x128xf32>, vector<24x128xf32> -> vector<24x128xf32>
    %99 = arith.addf %94, %98 : vector<24x128xf32>
    %c0_77 = arith.constant 0 : index
    %c0_78 = arith.constant 0 : index
    %100 = vector.load %arg7[%c0_77, %c0_78] : memref<1x128xf32, #tpu.memory_space<vmem>>, vector<1x128xf32>
    %101 = vector.broadcast %100 : vector<1x128xf32> to vector<24x128xf32>
    %102 = arith.addf %99, %101 : vector<24x128xf32>
    %cst_79 = arith.constant 0.000000e+00 : f32
    %103 = vector.broadcast %cst_79 : f32 to vector<24x128xf32>
    %104 = arith.maximumf %102, %103 : vector<24x128xf32>
    %c0_80 = arith.constant 0 : index
    %c0_81 = arith.constant 0 : index
    %105 = vector.load %arg8[%c0_80, %c0_81] : memref<128x128xf32, #tpu.memory_space<vmem>>, vector<128x128xf32>
    %cst_82 = arith.constant dense<0.000000e+00> : vector<24x128xf32>
    %106 = tpu.matmul %104, %105, %cst_82 {dimension_numbers = #tpu.dot_dimension_numbers<[1], [0], [0], [1], [0, 0, 1, 1], [], []>} : vector<24x128xf32>, vector<128x128xf32>, vector<24x128xf32> -> vector<24x128xf32>
    %c0_83 = arith.constant 0 : index
    %c0_84 = arith.constant 0 : index
    %107 = vector.load %arg9[%c0_83, %c0_84] : memref<1x128xf32, #tpu.memory_space<vmem>>, vector<1x128xf32>
    %108 = vector.broadcast %107 : vector<1x128xf32> to vector<24x128xf32>
    %109 = arith.addf %106, %108 : vector<24x128xf32>
    %c0_85 = arith.constant 0 : index
    %c0_86 = arith.constant 0 : index
    %c0_87 = arith.constant 0 : index
    %110 = vector.load %arg10[%c0_85, %c0_86, %c0_87] : memref<1x24x128xf32, #tpu.memory_space<vmem>>, vector<1x24x128xf32>
    %111 = vector.shape_cast %110 : vector<1x24x128xf32> to vector<24x128xf32>
    %112 = vector.shape_cast %109 : vector<24x128xf32> to vector<1x24x128xf32>
    tpu.vector_store %arg10[%c0_85, %c0_86, %c0_87], %112 {strides = array<i32>} : memref<1x24x128xf32, #tpu.memory_space<vmem>>, vector<1x24x128xf32>,
    return
  }
  func.func @transform_0(%arg0: i32) -> (i32, i32, i32) {
    %c0_i32 = arith.constant 0 : i32
    %c0_i32_0 = arith.constant 0 : i32
    %c0_i32_1 = arith.constant 0 : i32
    return %arg0, %c0_i32, %c0_i32_0 : i32, i32, i32
  }
  func.func @transform_1(%arg0: i32) -> (i32, i32, i32) {
    %c0_i32 = arith.constant 0 : i32
    %c0_i32_0 = arith.constant 0 : i32
    %c0_i32_1 = arith.constant 0 : i32
    %c0_i32_2 = arith.constant 0 : i32
    return %c0_i32, %c0_i32_0, %c0_i32_1 : i32, i32, i32
  }
  func.func @transform_2(%arg0: i32) -> (i32, i32) {
    %c0_i32 = arith.constant 0 : i32
    %c0_i32_0 = arith.constant 0 : i32
    %c0_i32_1 = arith.constant 0 : i32
    return %c0_i32, %c0_i32_0 : i32, i32
  }
  func.func @transform_3(%arg0: i32) -> (i32, i32, i32) {
    %c0_i32 = arith.constant 0 : i32
    %c0_i32_0 = arith.constant 0 : i32
    %c0_i32_1 = arith.constant 0 : i32
    %c0_i32_2 = arith.constant 0 : i32
    return %c0_i32, %c0_i32_0, %c0_i32_1 : i32, i32, i32
  }
  func.func @transform_4(%arg0: i32) -> (i32, i32) {
    %c0_i32 = arith.constant 0 : i32
    %c0_i32_0 = arith.constant 0 : i32
    %c0_i32_1 = arith.constant 0 : i32
    return %c0_i32, %c0_i32_0 : i32, i32
  }
  func.func @transform_5(%arg0: i32) -> (i32, i32, i32) {
    %c0_i32 = arith.constant 0 : i32
    %c0_i32_0 = arith.constant 0 : i32
    %c0_i32_1 = arith.constant 0 : i32
    %c0_i32_2 = arith.constant 0 : i32
    return %c0_i32, %c0_i32_0, %c0_i32_1 : i32, i32, i32
  }
  func.func @transform_6(%arg0: i32) -> (i32, i32) {
    %c0_i32 = arith.constant 0 : i32
    %c0_i32_0 = arith.constant 0 : i32
    %c0_i32_1 = arith.constant 0 : i32
    return %c0_i32, %c0_i32_0 : i32, i32
  }
  func.func @transform_7(%arg0: i32) -> (i32, i32) {
    %c0_i32 = arith.constant 0 : i32
    %c0_i32_0 = arith.constant 0 : i32
    %c0_i32_1 = arith.constant 0 : i32
    return %c0_i32, %c0_i32_0 : i32, i32
  }
  func.func @transform_8(%arg0: i32) -> (i32, i32) {
    %c0_i32 = arith.constant 0 : i32
    %c0_i32_0 = arith.constant 0 : i32
    %c0_i32_1 = arith.constant 0 : i32
    return %c0_i32, %c0_i32_0 : i32, i32
  }
  func.func @transform_9(%arg0: i32) -> (i32, i32, i32) {
    %c0_i32 = arith.constant 0 : i32
    %c0_i32_0 = arith.constant 0 : i32
    %c0_i32_1 = arith.constant 0 : i32
    return %arg0, %c0_i32, %c0_i32_0 : i32, i32, i32
  }
}

</mosaic_0001>

<bundles_post_ra>
// kernel: tpu_custom_call.1
= control target key start
LH: loop header
LB: loop body
LE: loop exit
PB: predicated region body
PF: predicated region fallthrough
CT: control target
= control target key end

     0   :  { %14 = vsyncpa [#allocation4], 0  ;;  %s4261_s0 = inlined_call_operand.vmem [shape: f32[4,28,128], index: 0, kind: input, shape index: {}]   ;;  %s4262_s1 = inlined_call_operand.hbm [shape: f32[5,128,128], index: 1, kind: input, shape index: {}]   ;;  %s4263_s2 = inlined_call_operand.vmem [shape: f32[1,128], index: 2, kind: input, shape index: {}]   ;;  %s4264_s3 = inlined_call_operand.hbm [shape: f32[5,128,128], index: 3, kind: input, shape index: {}]   ;;  %s4265_s4 = inlined_call_operand.vmem [shape: f32[1,128], index: 4, kind: input, shape index: {}]   ;;  %s4266_s5 = inlined_call_operand.hbm [shape: f32[5,128,128], index: 5, kind: input, shape index: {}]   ;;  %s4267_s6 = inlined_call_operand.vmem [shape: f32[1,128], index: 6, kind: input, shape index: {}]   ;;  %s4268_s7 = inlined_call_operand.vmem [shape: f32[128,128], index: 7, kind: input, shape index: {}]   ;;  %s4269_s8 = inlined_call_operand.vmem [shape: f32[1,128], index: 8, kind: input, shape index: {}]   ;;  %s4270_s9 = inlined_call_operand.hbm [shape: f32[4,24,128], index: 9, kind: output, shape index: {}]  }
   0x1   :  { %15 = vsyncpa [#allocation7], 0 }
   0x2   :  { %16 = vsyncpa [#allocation5], 0 }
   0x3   :  { %18 = vsyncpa [#allocation5 + $0x1], 0  ;;  %s3543_s30 = smov 0   ;;  %s3545_s10 = smov 0  }
   0x4   :  { %s3547_s11 = smov 0   ;;  %s3549_s12 = smov 0  }
   0x5 LB: > { %s3564_s13 = sadd.s32 4294967295, %s3481_s12   ;;  %s2277_s14 = sadd.s32 4294967294, %s3481_s12   ;;  %s3481_s12 = sphi %s3549_s12, %s4286_s12   ;;  %s3477_s11 = sphi %s3547_s11, %s4285_s11   ;;  %s3473_s10 = sphi %s3545_s10, %s4284_s10   ;;  %s3469_s30 = sphi %s3543_s30, %s4283_s30  }
   0x6   : > { %s3568_s15 = sadd.s32 1, %s3481_s12   ;;  %s225_s16 = sadd.s32 1, %s3477_s11 }
   0x7   : > { %s222_s17 = ssub.s32 %s3481_s12, %s3568_s15  ;;  %p235_p0 = scmp.ne.s32.totalorder %s3477_s11, %s3473_s10 }
   0x8   : > { %p223_p1 = scmp.eq.s32.totalorder %s222_s17, 0  ;;  %p236_p2 = scmp.eq.s32.totalorder %s3564_s13, 3 }
   0x9   : > { %p241_p3 = scmp.ne.s32.totalorder %s3473_s10, %s3469_s30  ;;  %p242_p4 = scmp.eq.s32.totalorder %s2277_s14, 3 }
   0xa   : > { %s3579_s18 = scalar_select %p223_p1, %s3477_s11, %s225_s16  }
   0xb   : > { %p3581_p5 = por %p236_p2, %p235_p0  ;;  %p3585_p6 = por %p242_p4, %p241_p3 }
   0xc   : > { %p2278_p7 = scmp.ge.s32.totalorder %s3481_s12, 1  ;;  %p249_p8 = scmp.lt.s32.totalorder %s3481_s12, 5 }
   0xd   : > { %s4273_s19 = scalar_select %p3581_p5, 1, 0 }
   0xe   : > { %s4274_s20 = scalar_select %p3585_p6, 1, 0 }
   0xf   : > { %p4271_p9 = scmp.eq.s32.totalorder %s3564_s13, 0  ;;  %p3592_p10 = pnand %p2278_p7, %p249_p8 }
  0x10   : > { %s3483_s22 = smov [#allocation6]   ;;  %s3484_s25 = smov [#allocation3]  }
  0x11   : > { %p3273_p11 = pneg %p3592_p10  ;;  %s277_s23 = sshll.u32 %s3483_s22, 4  ;;  %s278_s23 = int_to_ptr.vmem [resolvable:$true] %s277_s23 }
  0x12   : > { %s261_s26 = sshll.u32 %s3484_s25, 4  ;;  %s3485_s27 = smov [#allocation8]   ;;  %s262_s26 = int_to_ptr.vmem [resolvable:$true] %s261_s26 }
  0x13   : > { %p3600_p12 = pnand %p4271_p9, %p3273_p11  ;;  %s293_s28 = sshll.u32 %s3485_s27, 4  ;;  %s294_s28 = int_to_ptr.vmem [resolvable:$true] %s293_s28 }
  0x14   : > { %s3346_s29 = scalar_lea.vmem %s278_s23, 10240  ;;  %p3354_p3 = scmp.lt.s32.totalorder %s278_s23, %s278_s23 }
  0x15   : > { %p3337_p13 = pneg %p3600_p12  ;;  %p3347_p0 = scmp.ne.s32.totalorder %s278_s23, %s3346_s29 }
  0x16   : > { %p3355_p4 = scmp.lt.s32.totalorder %s3346_s29, %s3346_s29 }
  0x17   : > { %p3349_p1 = pnand %p3347_p0, %p3337_p13 }
  0x18   : > { %p3356_p7 = por %p3355_p4, %p3354_p3 }
  0x19   : > { %p3350_p2 = pneg %p3349_p1 }
  0x1b   : > { %p3357_p8 = pnand %p3356_p7, %p3350_p2 }
  0x1d   : > { %3360 = shalt.err (!%p3357_p8)
}
  0x1e   : > { %s3486_s14 = smov 128   ;;  %s3487_s16 = smov 8  }
  0x1f   : > { %3279 = dma.hbm_to_vmem [thread:$0]  (!%p3600_p12), %s4264_s3, 10240, %s278_s23, [#allocation7], %s3486_s14, %s3486_s14, %s3487_s16  }
  0x20   : > { %s3372_s25 = scalar_lea.vmem %s262_s26, 10240  ;;  %p3380_p9 = scmp.lt.s32.totalorder %s262_s26, %s262_s26 }
  0x21   : > { %p3373_p11 = scmp.ne.s32.totalorder %s262_s26, %s3372_s25  ;;  %p3381_p6 = scmp.lt.s32.totalorder %s3372_s25, %s3372_s25 }
  0x23   : > { %p3375_p0 = pnand %p3373_p11, %p3337_p13  ;;  %p3382_p3 = por %p3381_p6, %p3380_p9 }
  0x25   : > { %p3376_p1 = pneg %p3375_p0 }
  0x27   : > { %p3383_p2 = pnand %p3382_p3, %p3376_p1 }
  0x29   : > { %3386 = shalt.err (!%p3383_p2)
}
  0x2a   : > { %3276 = dma.hbm_to_vmem [thread:$0]  (!%p3600_p12), %s4262_s1, 10240, %s262_s26, [#allocation4], %s3486_s14, %s3486_s14, %s3487_s16  }
  0x2b   : > { %s3398_s23 = scalar_lea.vmem %s294_s28, 10240  ;;  %p3406_p11 = scmp.lt.s32.totalorder %s294_s28, %s294_s28 }
  0x2c   : > { %p3399_p4 = scmp.ne.s32.totalorder %s294_s28, %s3398_s23  ;;  %p3407_p0 = scmp.lt.s32.totalorder %s3398_s23, %s3398_s23 }
  0x2e   : > { %p3401_p7 = pnand %p3399_p4, %p3337_p13  ;;  %p3408_p5 = por %p3407_p0, %p3406_p11 }
  0x30   : > { %p3402_p8 = pneg %p3401_p7 }
  0x32   : > { %p3409_p6 = pnand %p3408_p5, %p3402_p8 }
  0x34   : > { %3412 = shalt.err (!%p3409_p6)
}
  0x35   : > { %3282 = dma.hbm_to_vmem [thread:$0]  (!%p3600_p12), %s4266_s5, 10240, %s294_s28, [#allocation7], %s3486_s14, %s3486_s14, %s3487_s16  }
  0x36   : > { %326 = sbr.rel (%p3592_p10) target bundleno = 1145 (0x479), region = 56  ;;  %p4277_p9 = scmp.eq.s32.totalorder (!%p3592_p10), %s3564_s13, 0 }
  0x3b   : > { %3456 = dma.done.wait (%p4277_p9), [#allocation4], 10240   ;;  %p4278_p13 = pmov %p4277_p9 }
  0x3c   : > { %p4279_p1 = pmov %p4277_p9 }
  0x3d   : > { %3458 = vsyncadd (%p4278_p13), [#allocation4], 4294957056 }
  0x3e   : > { %3460 = dma.done.wait (%p4279_p1), [#allocation7], 20480   ;;  %p4280_p5 = pmov %p4279_p1 }
  0x3f   : > { %v3488_v0 = vmov 0.0   ;;  %vm3489_vm0 = vmmov 0   ;;  %p370_p10 = scmp.lt.s32.totalorder %s3564_s13, 3  ;;  %v415_v1 = vld [vmem:[#allocation3 + $0xf8] sm:$0xff]  ;;  %v414_v3 = vld [vmem:[#allocation3 + $0xf0] sm:$0xff]  ;;  %v413_v5 = vld [vmem:[#allocation3 + $0xe8] sm:$0xff] }
  0x40   : > { %3462 = vsyncadd (%p4280_p5), [#allocation7], 4294946816  ;;  %2601 = vmatprep.subr.mxu0 %v3488_v0  ;;  %375 = vst [vmem:[#allocation2] sm:$0xff] %v3488_v0  ;;  %2642 = vmatprep.subr.mxu1 %v3488_v0  ;;  %v398_v2 = vld [vmem:[#allocation3 + $0x78] sm:$0xff]  ;;  %v397_v4 = vld [vmem:[#allocation3 + $0x70] sm:$0xff]  ;;  %vm830_vm1 = vcmask 1043456  }
  0x41   : > { %376 = vst [vmem:[#allocation2 + $0x8] sm:$0xff] %v3488_v0  ;;  %377 = vst [vmem:[#allocation2 + $0x10] sm:$0xff] %v3488_v0  ;;  %2633 = vmatprep.mubr.msk.f32.mxu0 %vm3489_vm0, %v3488_v0  ;;  %2674 = vmatprep.mubr.msk.f32.mxu1 %vm3489_vm0, %v3488_v0  ;;  %v396_v6 = vld [vmem:[#allocation3 + $0x68] sm:$0xff]  ;;  %s371_s21 = scalar_select %p370_p10, %s3564_s13, 3  ;;  %v412_v7 = vld [vmem:[#allocation3 + $0xe0] sm:$0xff]  ;;  %vm420_vm2 = vcmask 1046528  }
  0x42   : > { %378 = vst [vmem:[#allocation2 + $0x18] sm:$0xf] %v3488_v0  ;;  %2602 = vmatpush3.msra.mxu0 %v415_v1  ;;  %2643 = vmatpush3.msra.mxu1 %v398_v2  ;;  %v395_v8 = vld [vmem:[#allocation3 + $0x60] sm:$0xff]  ;;  %v411_v9 = vld [vmem:[#allocation3 + $0xd8] sm:$0xff]  ;;  %v410_v11 = vld [vmem:[#allocation3 + $0xd0] sm:$0xff]  ;;  %vm608_vm3 = vcmask 1045504  }
  0x43   : > { %2603 = vmatprep.subr.mxu0 %v3488_v0  ;;  %2644 = vmatprep.subr.mxu1 %v3488_v0  ;;  %v394_v10 = vld [vmem:[#allocation3 + $0x58] sm:$0xff]  ;;  %s2296_s24 = sshll.u32 %s371_s21, 5  ;;  %v393_v12 = vld [vmem:[#allocation3 + $0x50] sm:$0xff]  ;;  %v409_v13 = vld [vmem:[#allocation3 + $0xc8] sm:$0xff]  ;;  %vm719_vm4 = vcmask 1044480   ;;  %s367_s27 = sand.u32 1, %s3473_s10  }
  0x44   : > { %2604 = vmatpush3.msra.mxu0 %v414_v3  ;;  %2645 = vmatpush3.msra.mxu1 %v397_v4  ;;  %s3663_s14 = scalar_lea.vmem %s4261_s0, %s2296_s24  ;;  %v392_v14 = vld [vmem:[#allocation3 + $0x48] sm:$0xff]  ;;  %v408_v15 = vld [vmem:[#allocation3 + $0xc0] sm:$0xff]  ;;  %v407_v21 = vld [vmem:[#allocation3 + $0xb8] sm:$0xff]  ;;  %s3257_s29 = smul.u32 24, %s367_s27 }
  0x45   : > { %2605 = vmatprep.subr.mxu0 %v3488_v0  ;;  %2646 = vmatprep.subr.mxu1 %v3488_v0  ;;  %v391_v16 = vld [vmem:[#allocation3 + $0x40] sm:$0xff]  ;;  %v3673_v18 = vld [vmem:[%s3663_s14 + $0x8] sm:$0xff]  ;;  %v390_v22 = vld [vmem:[#allocation3 + $0x38] sm:$0xff]  ;;  %s3258_s21 = smul.u32 384, %s3564_s13  ;;  %s4221_s16 = scalar_lea.sflag [#allocation5], %s367_s27 }
  0x46   : > { %2606 = vmatpush3.msra.mxu0 %v413_v5  ;;  %2647 = vmatpush3.msra.mxu1 %v396_v6  ;;  %v3670_v17 = vld [vmem:[%s3663_s14] sm:$0xff]  ;;  %v832_v20 = vrot.slane %v3673_v18, 4  ;;  %v406_v24 = vld [vmem:[#allocation3 + $0xb0] sm:$0xff]  ;;  %v405_v26 = vld [vmem:[#allocation3 + $0xa8] sm:$0xff]  ;;  %v422_v35 = vrot.slane %v3673_v18, 1  ;;  %s369_s22 = scalar_lea.vmem [#allocation9], %s3257_s29 }
  0x47   : > { %2607 = vmatprep.subr.mxu0 %v3488_v0  ;;  %2648 = vmatprep.subr.mxu1 %v3488_v0  ;;  %v831_v19 = vrot.slane %v3670_v17, 4  ;;  %v389_v25 = vld [vmem:[#allocation3 + $0x30] sm:$0xff]  ;;  %v388_v27 = vld [vmem:[#allocation3 + $0x28] sm:$0xff]  ;;  %v404_v28 = vld [vmem:[#allocation3 + $0xa0] sm:$0xff]  ;;  %v421_v34 = vrot.slane %v3670_v17, 1  ;;  %s2184_s24 = sshll.u32 %s369_s22, 4  ;;  %s4214_s24 = int_to_ptr.vmem [resolvable:$true] %s2184_s24 }
  0x48   : > { %2608 = vmatpush3.msra.mxu0 %v412_v7  ;;  %2649 = vmatpush3.msra.mxu1 %v395_v8  ;;  %v387_v29 = vld [vmem:[#allocation3 + $0x20] sm:$0xff]  ;;  %v403_v30 = vld [vmem:[#allocation3 + $0x98] sm:$0xff]  ;;  %v402_v32 = vld [vmem:[#allocation3 + $0x90] sm:$0xff]  ;;  %s3413_s13 = scalar_lea.vmem %s4214_s24, 384  ;;  %p4281_p3 = scmp.ne.s32.totalorder %s4273_s19, 0 }
  0x49   : > { %2609 = vmatprep.subr.mxu0 %v3488_v0  ;;  %2650 = vmatprep.subr.mxu1 %v3488_v0  ;;  %v3682_v23 = vsel %vm830_vm1, %v831_v19, %v832_v20  ;;  %v386_v31 = vld [vmem:[#allocation3 + $0x18] sm:$0xff]  ;;  %v385_v33 = vld [vmem:[#allocation3 + $0x10] sm:$0xff]  ;;  %v401_v36 = vld [vmem:[#allocation3 + $0x88] sm:$0xff]  ;;  %v423_v40 = vsel %vm420_vm2, %v421_v34, %v422_v35  ;;  %v721_v19 = vrot.slane %v3673_v18, 3  ;;  %p3414_p12 = scmp.ne.s32.totalorder %s4214_s24, %s3413_s13  ;;  %s3490_s25 = smov [#allocation9]  }
  0x4a   : > { %2610 = vmatpush3.msra.mxu0 %v411_v9  ;;  %2651 = vmatpush3.msra.mxu1 %v394_v10  ;;  %v384_v37 = vld [vmem:[#allocation3 + $0x8] sm:$0xff]  ;;  %v400_v38 = vld [vmem:[#allocation3 + $0x80] sm:$0xff]  ;;  %v607_v41 = vld [vmem:[#allocation3 + $0x178] sm:$0xff]  ;;  %s3417_s29 = sshll.u32 %s3490_s25, 4  ;;  %s3418_s29 = int_to_ptr.vmem [resolvable:$false] %s3417_s29 }
  0x4b   : > { %2611 = vmatprep.subr.mxu0 %v3488_v0  ;;  %2652 = vmatprep.subr.mxu1 %v3488_v0  ;;  %v383_v39 = vld [vmem:[#allocation3] sm:$0xff]  ;;  %v606_v42 = vld [vmem:[#allocation3 + $0x170] sm:$0xff]  ;;  %v718_v43 = vld [vmem:[#allocation3 + $0x1f8] sm:$0xff]  ;;  %p3415_p2 = pnand %p3414_p12, %p4281_p3  ;;  %s3419_s23 = scalar_lea.vmem %s3418_s29, 768 }
  0x4c   : > { %2612 = vmatpush3.msra.mxu0 %v410_v11  ;;  %2653 = vmatpush3.msra.mxu1 %v393_v12  ;;  %v605_v44 = vld [vmem:[#allocation3 + $0x168] sm:$0xff]  ;;  %v717_v45 = vld [vmem:[#allocation3 + $0x1f0] sm:$0xff]  ;;  %v604_v46 = vld [vmem:[#allocation3 + $0x160] sm:$0xff]  ;;  %v609_v11 = vrot.slane %v3670_v17, 2  ;;  %v610_v12 = vrot.slane %v3673_v18, 2  ;;  %p3420_p7 = scmp.lt.s32.totalorder %s4214_s24, %s3418_s29  ;;  %p3421_p8 = scmp.lt.s32.totalorder %s3419_s23, %s3413_s13 }
  0x4d   : > { %2613 = vmatprep.subr.mxu0 %v3488_v0  ;;  %2654 = vmatprep.subr.mxu1 %v3488_v0  ;;  %v716_v47 = vld [vmem:[#allocation3 + $0x1e8] sm:$0xff]  ;;  %v603_v48 = vld [vmem:[#allocation3 + $0x158] sm:$0xff]  ;;  %v715_v49 = vld [vmem:[#allocation3 + $0x1e0] sm:$0xff]  ;;  %p3416_p4 = pneg %p3415_p2 }
  0x4e   : > { %2614 = vmatpush3.msra.mxu0 %v409_v13  ;;  %2655 = vmatpush3.msra.mxu1 %v392_v14  ;;  %v602_v50 = vld [vmem:[#allocation3 + $0x150] sm:$0xff]  ;;  %v714_v51 = vld [vmem:[#allocation3 + $0x1d8] sm:$0xff]  ;;  %v601_v52 = vld [vmem:[#allocation3 + $0x148] sm:$0xff]  ;;  %p3422_p11 = por %p3421_p8, %p3420_p7 }
  0x4f   : > { %2615 = vmatprep.subr.mxu0 %v3488_v0  ;;  %2656 = vmatprep.subr.mxu1 %v3488_v0  ;;  %v713_v53 = vld [vmem:[#allocation3 + $0x1d0] sm:$0xff]  ;;  %v600_v54 = vld [vmem:[#allocation3 + $0x140] sm:$0xff]  ;;  %v712_v55 = vld [vmem:[#allocation3 + $0x1c8] sm:$0xff] }
  0x50   : > { %2616 = vmatpush3.msra.mxu0 %v408_v15  ;;  %2657 = vmatpush3.msra.mxu1 %v391_v16  ;;  %v3720_v56 = vld [vmem:[%s3663_s14 + $0x10] sm:$0xff]  ;;  %v599_v57 = vld [vmem:[#allocation3 + $0x138] sm:$0xff]  ;;  %v711_v58 = vld [vmem:[#allocation3 + $0x1c0] sm:$0xff]  ;;  %v720_v16 = vrot.slane %v3670_v17, 3  ;;  %p3423_p0 = pnand %p3422_p11, %p3416_p4 }
  0x51   : > { %2617 = vmatprep.subr.mxu0 %v3488_v0  ;;  %2658 = vmatprep.subr.mxu1 %v3488_v0  ;;  %v598_v59 = vld [vmem:[#allocation3 + $0x130] sm:$0xff]  ;;  %v710_v60 = vld [vmem:[#allocation3 + $0x1b8] sm:$0xff]  ;;  %v424_v61 = vrot.slane %v3720_v56, 1  ;;  %v597_v62 = vld [vmem:[#allocation3 + $0x128] sm:$0xff] }
  0x52   : > { %2618 = vmatpush3.msra.mxu0 %v407_v21  ;;  %2659 = vmatpush3.msra.mxu1 %v390_v22  ;;  %v709_v63 = vld [vmem:[#allocation3 + $0x1b0] sm:$0xff]  ;;  %v3730_v1 = vld [vmem:[%s3663_s14 + $0x18] sm:$0xf]  ;;  %v596_v3 = vld [vmem:[#allocation3 + $0x120] sm:$0xff]  ;;  %v611_v22 = vsel %vm608_vm3, %v609_v11, %v610_v12  ;;  %s4219_s14 = scalar_lea.hbm %s4270_s9, %s3258_s21 }
  0x53   : > { %2619 = vmatprep.subr.mxu0 %v3488_v0  ;;  %2660 = vmatprep.subr.mxu1 %v3488_v0  ;;  %v425_v2 = vsel %vm420_vm2, %v422_v35, %v424_v61  ;;  %v708_v4 = vld [vmem:[#allocation3 + $0x1a8] sm:$0xff]  ;;  %v426_v5 = vrot.slane %v3730_v1, 1  ;;  %v595_v6 = vld [vmem:[#allocation3 + $0x118] sm:$0xff]  ;;  %v707_v7 = vld [vmem:[#allocation3 + $0x1a0] sm:$0xff] }
  0x54   : > { %2620 = vmatpush3.msra.mxu0 %v406_v24  ;;  %2661 = vmatpush3.msra.mxu1 %v389_v25  ;;  %v594_v9 = vld [vmem:[#allocation3 + $0x110] sm:$0xff]  ;;  %v706_v10 = vld [vmem:[#allocation3 + $0x198] sm:$0xff]  ;;  %v593_v13 = vld [vmem:[#allocation3 + $0x108] sm:$0xff]  ;;  %v612_v25 = vrot.slane %v3720_v56, 2 }
  0x55   : > { %2621 = vmatprep.subr.mxu0 %v3488_v0  ;;  %2662 = vmatprep.subr.mxu1 %v3488_v0  ;;  %v427_v8 = vsel %vm420_vm2, %v424_v61, %v426_v5  ;;  %v705_v14 = vld [vmem:[#allocation3 + $0x190] sm:$0xff]  ;;  %v592_v15 = vld [vmem:[#allocation3 + $0x100] sm:$0xff]  ;;  %v704_v21 = vld [vmem:[#allocation3 + $0x188] sm:$0xff] }
  0x56   : > { %2622 = vmatpush3.msra.mxu0 %v405_v26  ;;  %2663 = vmatpush3.msra.mxu1 %v388_v27  ;;  %v703_v24 = vld [vmem:[#allocation3 + $0x180] sm:$0xff]  ;;  %v722_v26 = vsel %vm719_vm4, %v720_v16, %v721_v19  ;;  %v723_v27 = vrot.slane %v3720_v56, 3  ;;  %v963_v61 = vld [vmem:[#allocation6 + $0x48] sm:$0xff]  ;;  %v973_v16 = vld [vmem:[#allocation6 + $0x90] sm:$0xff] }
  0x57   : > { %2623 = vmatprep.subr.mxu0 %v3488_v0  ;;  %2664 = vmatprep.subr.mxu1 %v3488_v0  ;;  %v826_v34 = vld [vmem:[#allocation3 + $0x260] sm:$0xff]  ;;  %v976_v11 = vld [vmem:[#allocation6 + $0xa8] sm:$0xff] }
  0x58   : > { %2624 = vmatpush3.msra.mxu0 %v404_v28  ;;  %2665 = vmatpush3.msra.mxu1 %v387_v29  ;;  %v828_v28 = vld [vmem:[#allocation3 + $0x270] sm:$0xff]  ;;  %v613_v29 = vsel %vm608_vm3, %v610_v12, %v612_v25  ;;  %v979_v5 = vld [vmem:[#allocation6 + $0xc0] sm:$0xff]  ;;  %v955_v12 = vld [vmem:[#allocation6 + $0x8] sm:$0xff] }
  0x59   : > { %2625 = vmatprep.subr.mxu0 %v3488_v0  ;;  %2666 = vmatprep.subr.mxu1 %v3488_v0 }
  0x5a   : > { %2626 = vmatpush3.msra.mxu0 %v403_v30  ;;  %2667 = vmatpush3.msra.mxu1 %v386_v31  ;;  %v614_v30 = vrot.slane %v3730_v1, 2  ;;  %v827_v31 = vld [vmem:[#allocation3 + $0x268] sm:$0xff] }
  0x5b   : > { %2627 = vmatprep.subr.mxu0 %v3488_v0  ;;  %2668 = vmatprep.subr.mxu1 %v3488_v0 }
  0x5c   : > { %2628 = vmatpush3.msra.mxu0 %v402_v32  ;;  %2669 = vmatpush3.msra.mxu1 %v385_v33  ;;  %v724_v32 = vsel %vm719_vm4, %v721_v19, %v723_v27  ;;  %v725_v33 = vrot.slane %v3730_v1, 3  ;;  %v615_v35 = vsel %vm608_vm3, %v612_v25, %v614_v30  ;;  %v972_v19 = vld [vmem:[#allocation6 + $0x88] sm:$0xff] }
  0x5d   : > { %2629 = vmatprep.subr.mxu0 %v3488_v0  ;;  %2670 = vmatprep.subr.mxu1 %v3488_v0 }
  0x5e   : > { %2630 = vmatpush3.msra.mxu0 %v401_v36  ;;  %2671 = vmatpush3.msra.mxu1 %v384_v37  ;;  %v825_v36 = vld [vmem:[#allocation3 + $0x258] sm:$0xff]  ;;  %v726_v37 = vsel %vm719_vm4, %v723_v27, %v725_v33 }
  0x5f   : > { %2631 = vmatprep.subr.mxu0 %v3488_v0  ;;  %2672 = vmatprep.subr.mxu1 %v3488_v0 }
  0x60   : > { %2632 = vmatpush3.msra.mxu0 %v400_v38  ;;  %2673 = vmatpush3.msra.mxu1 %v383_v39  ;;  %v824_v38 = vld [vmem:[#allocation3 + $0x250] sm:$0xff]  ;;  %v823_v39 = vld [vmem:[#allocation3 + $0x248] sm:$0xff] }
  0x61   : > { %2634 = vmatmul.mubr.f32.vlgmr.msra.gmra.mxu0 %v423_v40  ;;  %2683 = vmatprep.subr.mxu0 %v3488_v0  ;;  %v822_v40 = vld [vmem:[#allocation3 + $0x240] sm:$0xff] }
  0x62   : > { %2675 = vmatmul.mubr.f32.vlgmr.msra.gmra.mxu1 %v3670_v17  ;;  %2684 = vmatpush3.msra.mxu0 %v607_v41  ;;  %v829_v17 = vld [vmem:[#allocation3 + $0x278] sm:$0xff] }
  0x63   : > { %2685 = vmatprep.subr.mxu0 %v3488_v0  ;;  %2724 = vmatprep.subr.mxu1 %v3488_v0  ;;  %v821_v41 = vld [vmem:[#allocation3 + $0x238] sm:$0xff] }
  0x64   : > { %2686 = vmatpush3.msra.mxu0 %v606_v42  ;;  %2725 = vmatpush3.msra.mxu1 %v718_v43  ;;  %v820_v42 = vld [vmem:[#allocation3 + $0x230] sm:$0xff]  ;;  %v819_v43 = vld [vmem:[#allocation3 + $0x228] sm:$0xff] }
  0x65   : > { %2687 = vmatprep.subr.mxu0 %v3488_v0  ;;  %2726 = vmatprep.subr.mxu1 %v3488_v0 }
  0x66   : > { %2688 = vmatpush3.msra.mxu0 %v605_v44  ;;  %2727 = vmatpush3.msra.mxu1 %v717_v45  ;;  %v818_v44 = vld [vmem:[#allocation3 + $0x220] sm:$0xff]  ;;  %v817_v45 = vld [vmem:[#allocation3 + $0x218] sm:$0xff] }
  0x67   : > { %2689 = vmatprep.subr.mxu0 %v3488_v0  ;;  %2728 = vmatprep.subr.mxu1 %v3488_v0 }
  0x68   : > { %2690 = vmatpush3.msra.mxu0 %v604_v46  ;;  %2729 = vmatpush3.msra.mxu1 %v716_v47  ;;  %v816_v46 = vld [vmem:[#allocation3 + $0x210] sm:$0xff]  ;;  %v815_v47 = vld [vmem:[#allocation3 + $0x208] sm:$0xff] }
  0x69   : > { %2691 = vmatprep.subr.mxu0 %v3488_v0  ;;  %2730 = vmatprep.subr.mxu1 %v3488_v0 }
  0x6a   : > { %2692 = vmatpush3.msra.mxu0 %v603_v48  ;;  %2731 = vmatpush3.msra.mxu1 %v715_v49  ;;  %v814_v48 = vld [vmem:[#allocation3 + $0x200] sm:$0xff]  ;;  %v834_v49 = vrot.slane %v3720_v56, 4 }
  0x6b   : > { %2693 = vmatprep.subr.mxu0 %v3488_v0  ;;  %2732 = vmatprep.subr.mxu1 %v3488_v0 }
  0x6c   : > { %2694 = vmatpush3.msra.mxu0 %v602_v50  ;;  %2733 = vmatpush3.msra.mxu1 %v714_v51  ;;  %v835_v50 = vsel %vm830_vm1, %v832_v20, %v834_v49  ;;  %v836_v51 = vrot.slane %v3730_v1, 4  ;;  %v985_v20 = vld [vmem:[#allocation6 + $0xf0] sm:$0xff] }
  0x6d   : > { %2695 = vmatprep.subr.mxu0 %v3488_v0  ;;  %2734 = vmatprep.subr.mxu1 %v3488_v0  ;;  %v981_v1 = vld [vmem:[#allocation6 + $0xd0] sm:$0xff] }
  0x6e   : > { %2696 = vmatpush3.msra.mxu0 %v601_v52  ;;  %2735 = vmatpush3.msra.mxu1 %v713_v53  ;;  %v837_v52 = vsel %vm830_vm1, %v834_v49, %v836_v51  ;;  %v968_v53 = vld [vmem:[#allocation6 + $0x70] sm:$0xff] }
  0x6f   : > { %2697 = vmatprep.subr.mxu0 %v3488_v0  ;;  %2736 = vmatprep.subr.mxu1 %v3488_v0 }
  0x70   : > { %2698 = vmatpush3.msra.mxu0 %v600_v54  ;;  %2737 = vmatpush3.msra.mxu1 %v712_v55  ;;  %v986_v54 = vld [vmem:[#allocation6 + $0xf8] sm:$0xff]  ;;  %v984_v55 = vld [vmem:[#allocation6 + $0xe8] sm:$0xff] }
  0x71   : > { %2699 = vmatprep.subr.mxu0 %v3488_v0  ;;  %2738 = vmatprep.subr.mxu1 %v3488_v0 }
  0x72   : > { %2700 = vmatpush3.msra.mxu0 %v599_v57  ;;  %2739 = vmatpush3.msra.mxu1 %v711_v58  ;;  %v983_v57 = vld [vmem:[#allocation6 + $0xe0] sm:$0xff]  ;;  %v965_v58 = vld [vmem:[#allocation6 + $0x58] sm:$0xff] }
  0x73   : > { %2701 = vmatprep.subr.mxu0 %v3488_v0  ;;  %2740 = vmatprep.subr.mxu1 %v3488_v0 }
  0x74   : > { %2702 = vmatpush3.msra.mxu0 %v598_v59  ;;  %2741 = vmatpush3.msra.mxu1 %v710_v60  ;;  %v982_v59 = vld [vmem:[#allocation6 + $0xd8] sm:$0xff]  ;;  %v964_v60 = vld [vmem:[#allocation6 + $0x50] sm:$0xff] }
  0x75   : > { %2703 = vmatprep.subr.mxu0 %v3488_v0  ;;  %2742 = vmatprep.subr.mxu1 %v3488_v0 }
  0x76   : > { %2704 = vmatpush3.msra.mxu0 %v597_v62  ;;  %2743 = vmatpush3.msra.mxu1 %v709_v63  ;;  %v962_v62 = vld [vmem:[#allocation6 + $0x40] sm:$0xff]  ;;  %v961_v63 = vld [vmem:[#allocation6 + $0x38] sm:$0xff] }
  0x77   : > { %2636 = vmatprep.mubr.msk.f32.mxu0 %vm3489_vm0, %v3488_v0  ;;  %2705 = vmatprep.subr.mxu0 %v3488_v0 }
  0x78   : > { %2744 = vmatprep.subr.mxu1 %v3488_v0  ;;  %2637 = vmatmul.mubr.f32.gmra.mxu0 %v425_v2  ;;  %v960_v2 = vld [vmem:[#allocation6 + $0x30] sm:$0xff] }
  0x79   : > { %2706 = vmatpush3.msra.mxu0 %v596_v3  ;;  %2745 = vmatpush3.msra.mxu1 %v708_v4  ;;  %v980_v3 = vld [vmem:[#allocation6 + $0xc8] sm:$0xff] }
  0x7a   : > { %2677 = vmatprep.mubr.msk.f32.mxu1 %vm3489_vm0, %v3488_v0  ;;  %2707 = vmatprep.subr.mxu0 %v3488_v0  ;;  %v959_v4 = vld [vmem:[#allocation6 + $0x28] sm:$0xff] }
  0x7b   : > { %2746 = vmatprep.subr.mxu1 %v3488_v0  ;;  %2678 = vmatmul.mubr.f32.gmra.mxu1 %v3673_v18  ;;  %v967_v18 = vld [vmem:[#allocation6 + $0x68] sm:$0xff] }
  0x7c   : > { %2708 = vmatpush3.msra.mxu0 %v595_v6  ;;  %2747 = vmatpush3.msra.mxu1 %v707_v7  ;;  %v958_v6 = vld [vmem:[#allocation6 + $0x20] sm:$0xff]  ;;  %v978_v7 = vld [vmem:[#allocation6 + $0xb8] sm:$0xff] }
  0x7d   : > { %2639 = vmatprep.mubr.msk.f32.mxu0 %vm3489_vm0, %v3488_v0  ;;  %2709 = vmatprep.subr.mxu0 %v3488_v0 }
  0x7e   : > { %2748 = vmatprep.subr.mxu1 %v3488_v0  ;;  %2640 = vmatmul.mubr.f32.gmra.mxu0 %v427_v8  ;;  %v957_v8 = vld [vmem:[#allocation6 + $0x18] sm:$0xff] }
  0x7f   : > { %2710 = vmatpush3.msra.mxu0 %v594_v9  ;;  %2749 = vmatpush3.msra.mxu1 %v706_v10  ;;  %v977_v9 = vld [vmem:[#allocation6 + $0xb0] sm:$0xff] }
  0x80   : > { %2680 = vmatprep.mubr.msk.f32.mxu1 %vm3489_vm0, %v3488_v0  ;;  %2711 = vmatprep.subr.mxu0 %v3488_v0  ;;  %v956_v10 = vld [vmem:[#allocation6 + $0x10] sm:$0xff] }
  0x81   : > { %2750 = vmatprep.subr.mxu1 %v3488_v0  ;;  %2681 = vmatmul.mubr.f32.gmra.mxu1 %v3720_v56  ;;  %v966_v56 = vld [vmem:[#allocation6 + $0x60] sm:$0xff] }
  0x82   : > { %2712 = vmatpush3.msra.mxu0 %v593_v13  ;;  %2751 = vmatpush3.msra.mxu1 %v705_v14  ;;  %v975_v13 = vld [vmem:[#allocation6 + $0xa0] sm:$0xff] }
  0x83   : > { %2713 = vmatprep.subr.mxu0 %v3488_v0  ;;  %2752 = vmatprep.subr.mxu1 %v3488_v0  ;;  %v954_v14 = vld [vmem:[#allocation6] sm:$0xff] }
  0x84   : > { %2714 = vmatpush3.msra.mxu0 %v592_v15  ;;  %2715 = vmatprep.mubr.msk.f32.mxu0 %vm3489_vm0, %v3488_v0  ;;  %v974_v15 = vld [vmem:[#allocation6 + $0x98] sm:$0xff] }
  0x85   : > { %2753 = vmatpush3.msra.mxu1 %v704_v21  ;;  %2716 = vmatmul.mubr.f32.vlgmr.msra.gmra.mxu0 %v611_v22  ;;  %v971_v21 = vld [vmem:[#allocation6 + $0x80] sm:$0xff] }
  0x86   : > { %2754 = vmatprep.subr.mxu1 %v3488_v0  ;;  %2765 = vmatprep.subr.mxu0 %v3488_v0 }
  0x87   : > { %2755 = vmatpush3.msra.mxu1 %v703_v24  ;;  %2756 = vmatprep.mubr.msk.f32.mxu1 %vm3489_vm0, %v3488_v0 }
  0x88   : > { %2766 = vmatpush3.msra.mxu0 %v829_v17  ;;  %2757 = vmatmul.mubr.f32.vlgmr.msra.gmra.mxu1 %v722_v26 }
  0x89   : > { %2767 = vmatprep.subr.mxu0 %v3488_v0  ;;  %2718 = vmatprep.mubr.msk.f32.mxu0 %vm3489_vm0, %v3488_v0 }
  0x8a   : > { %2768 = vmatpush3.msra.mxu0 %v828_v28  ;;  %2759 = vmatprep.mubr.msk.f32.mxu1 %vm3489_vm0, %v3488_v0 }
  0x8b   : > { %2719 = vmatmul.mubr.f32.gmra.mxu0 %v613_v29  ;;  %2769 = vmatprep.subr.mxu0 %v3488_v0 }
  0x8c   : > { %2770 = vmatpush3.msra.mxu0 %v827_v31  ;;  %2760 = vmatmul.mubr.f32.gmra.mxu1 %v724_v32 }
  0x8d   : > { %2771 = vmatprep.subr.mxu0 %v3488_v0  ;;  %2721 = vmatprep.mubr.msk.f32.mxu0 %vm3489_vm0, %v3488_v0 }
  0x8e   : > { %2772 = vmatpush3.msra.mxu0 %v826_v34  ;;  %2762 = vmatprep.mubr.msk.f32.mxu1 %vm3489_vm0, %v3488_v0 }
  0x8f   : > { %2722 = vmatmul.mubr.f32.gmra.mxu0 %v615_v35  ;;  %2773 = vmatprep.subr.mxu0 %v3488_v0 }
  0x90   : > { %2774 = vmatpush3.msra.mxu0 %v825_v36  ;;  %2763 = vmatmul.mubr.f32.gmra.mxu1 %v726_v37 }
  0x91   : > { %2775 = vmatprep.subr.mxu0 %v3488_v0  ;;  %2797 = vmatprep.mubr.msk.f32.mxu0 %vm3489_vm0, %v3488_v0 }
  0x92   : > { %2776 = vmatpush3.msra.mxu0 %v824_v38  ;;  %2806 = vmatprep.subr.mxu1 %v3488_v0 }
  0x93   : > { %2777 = vmatprep.subr.mxu0 %v3488_v0  ;;  %2838 = vmatprep.mubr.msk.f32.mxu1 %vm3489_vm0, %v3488_v0 }
  0x94   : > { %2778 = vmatpush3.msra.mxu0 %v823_v39  ;;  %2807 = vmatpush3.msra.mxu1 %v986_v54 }
  0x95   : > { %2779 = vmatprep.subr.mxu0 %v3488_v0  ;;  %2808 = vmatprep.subr.mxu1 %v3488_v0 }
  0x96   : > { %2780 = vmatpush3.msra.mxu0 %v822_v40  ;;  %2809 = vmatpush3.msra.mxu1 %v985_v20 }
  0x97   : > { %2781 = vmatprep.subr.mxu0 %v3488_v0  ;;  %2810 = vmatprep.subr.mxu1 %v3488_v0 }
  0x98   : > { %2782 = vmatpush3.msra.mxu0 %v821_v41  ;;  %2811 = vmatpush3.msra.mxu1 %v984_v55 }
  0x99   : > { %2783 = vmatprep.subr.mxu0 %v3488_v0  ;;  %2812 = vmatprep.subr.mxu1 %v3488_v0 }
  0x9a   : > { %2784 = vmatpush3.msra.mxu0 %v820_v42  ;;  %2813 = vmatpush3.msra.mxu1 %v983_v57 }
  0x9b   : > { %2785 = vmatprep.subr.mxu0 %v3488_v0  ;;  %2814 = vmatprep.subr.mxu1 %v3488_v0 }
  0x9c   : > { %2786 = vmatpush3.msra.mxu0 %v819_v43  ;;  %2815 = vmatpush3.msra.mxu1 %v982_v59 }
  0x9d   : > { %2787 = vmatprep.subr.mxu0 %v3488_v0  ;;  %2816 = vmatprep.subr.mxu1 %v3488_v0 }
  0x9e   : > { %2788 = vmatpush3.msra.mxu0 %v818_v44  ;;  %2817 = vmatpush3.msra.mxu1 %v981_v1 }
  0x9f   : > { %2789 = vmatprep.subr.mxu0 %v3488_v0  ;;  %2818 = vmatprep.subr.mxu1 %v3488_v0 }
  0xa0   : > { %2790 = vmatpush3.msra.mxu0 %v817_v45  ;;  %2819 = vmatpush3.msra.mxu1 %v980_v3 }
  0xa1   : > { %2791 = vmatprep.subr.mxu0 %v3488_v0  ;;  %2820 = vmatprep.subr.mxu1 %v3488_v0 }
  0xa2   : > { %2792 = vmatpush3.msra.mxu0 %v816_v46  ;;  %2821 = vmatpush3.msra.mxu1 %v979_v5 }
  0xa3   : > { %2793 = vmatprep.subr.mxu0 %v3488_v0  ;;  %2822 = vmatprep.subr.mxu1 %v3488_v0 }
  0xa4   : > { %2794 = vmatpush3.msra.mxu0 %v815_v47  ;;  %2823 = vmatpush3.msra.mxu1 %v978_v7 }
  0xa5   : > { %2795 = vmatprep.subr.mxu0 %v3488_v0  ;;  %2824 = vmatprep.subr.mxu1 %v3488_v0 }
  0xa6   : > { %2796 = vmatpush3.msra.mxu0 %v814_v48  ;;  %2825 = vmatpush3.msra.mxu1 %v977_v9 }
  0xa7   : > { %2798 = vmatmul.mubr.f32.vlgmr.msra.gmra.mxu0 %v3682_v23  ;;  %2847 = vmatprep.subr.mxu0 %v3488_v0  ;;  %v969_v23 = vld [vmem:[#allocation6 + $0x78] sm:$0xff] }
  0xa8   : > { %2800 = vmatprep.mubr.msk.f32.mxu0 %vm3489_vm0, %v3488_v0  ;;  %2848 = vmatpush3.msra.mxu0 %v969_v23  ;;  %v937_v23 = vlaneseq }
  0xa9   : > { %2849 = vmatprep.subr.mxu0 %v3488_v0  ;;  %2826 = vmatprep.subr.mxu1 %v3488_v0 }
  0xaa   : > { %2850 = vmatpush3.msra.mxu0 %v968_v53  ;;  %2827 = vmatpush3.msra.mxu1 %v976_v11  ;;  %v1286_v11 = vld [vmem:[#allocation6 + $0x1f0] sm:$0xff] }
  0xab   : > { %2801 = vmatmul.mubr.f32.gmra.mxu0 %v835_v50  ;;  %2851 = vmatprep.subr.mxu0 %v3488_v0 }
  0xac   : > { %2803 = vmatprep.mubr.msk.f32.mxu0 %vm3489_vm0, %v3488_v0  ;;  %2852 = vmatpush3.msra.mxu0 %v967_v18 }
  0xad   : > { %2853 = vmatprep.subr.mxu0 %v3488_v0  ;;  %2828 = vmatprep.subr.mxu1 %v3488_v0 }
  0xae   : > { %2854 = vmatpush3.msra.mxu0 %v966_v56  ;;  %2829 = vmatpush3.msra.mxu1 %v975_v13 }
  0xaf   : > { %2804 = vmatmul.mubr.f32.gmra.mxu0 %v837_v52  ;;  %2855 = vmatprep.subr.mxu0 %v3488_v0  ;;  %v2289_v52 = vld [vmem:[%s4263_s2] ss:$0 sm:$0xff] }
  0xb0   : > { %2879 = vmatprep.mubr.msk.f32.mxu0 %vm3489_vm0, %v3488_v0  ;;  %2856 = vmatpush3.msra.mxu0 %v965_v58  ;;  %v938_v58 = vshrl.u32 %v937_v23, 7 }
  0xb1   : > { %2857 = vmatprep.subr.mxu0 %v3488_v0  ;;  %2830 = vmatprep.subr.mxu1 %v3488_v0 }
  0xb2   : > { %2858 = vmatpush3.msra.mxu0 %v964_v60  ;;  %2831 = vmatpush3.msra.mxu1 %v974_v15 }
  0xb3   : > { %2859 = vmatprep.subr.mxu0 %v3488_v0  ;;  %2832 = vmatprep.subr.mxu1 %v3488_v0 }
  0xb4   : > { %2860 = vmatpush3.msra.mxu0 %v963_v61  ;;  %2833 = vmatpush3.msra.mxu1 %v973_v16 }
  0xb5   : > { %2861 = vmatprep.subr.mxu0 %v3488_v0  ;;  %2834 = vmatprep.subr.mxu1 %v3488_v0 }
  0xb6   : > { %2862 = vmatpush3.msra.mxu0 %v962_v62  ;;  %2835 = vmatpush3.msra.mxu1 %v972_v19  ;;  %v1177_v19 = vld [vmem:[#allocation6 + $0x178] sm:$0xff] }
  0xb7   : > { %2863 = vmatprep.subr.mxu0 %v3488_v0  ;;  %2836 = vmatprep.subr.mxu1 %v3488_v0 }
  0xb8   : > { %2864 = vmatpush3.msra.mxu0 %v961_v63  ;;  %2837 = vmatpush3.msra.mxu1 %v971_v21 }
  0xb9   : > { %2865 = vmatprep.subr.mxu0 %v3488_v0  ;;  %2888 = vmatprep.subr.mxu1 %v3488_v0 }
  0xba   : > { %2866 = vmatpush3.msra.mxu0 %v960_v2  ;;  %v3856_v2 = vadd.s32 16, %v938_v58 }
  0xbb   : > { %2867 = vmatprep.subr.mxu0 %v3488_v0 }
  0xbc   : > { %2868 = vmatpush3.msra.mxu0 %v959_v4  ;;  %vm943_vm5 = vcmp.lt.s32.totalorder %v3856_v2, 20  ;;  %v1844_v2 = vld [vmem:[#allocation8 + $0x1e0] sm:$0xff] }
  0xbd   : > { %2869 = vmatprep.subr.mxu0 %v3488_v0 }
  0xbe   : > { %2870 = vmatpush3.msra.mxu0 %v958_v6 }
  0xbf   : > { %2871 = vmatprep.subr.mxu0 %v3488_v0 }
  0xc0   : > { %2872 = vmatpush3.msra.mxu0 %v957_v8  ;;  %v1287_v8 = vld [vmem:[#allocation6 + $0x1f8] sm:$0xff] }
  0xc1   : > { %2873 = vmatprep.subr.mxu0 %v3488_v0 }
  0xc2   : > { %2874 = vmatpush3.msra.mxu0 %v956_v10 }
  0xc3   : > { %2875 = vmatprep.subr.mxu0 %v3488_v0 }
  0xc4   : > { %2876 = vmatpush3.msra.mxu0 %v955_v12  ;;  %v1285_v12 = vld [vmem:[#allocation6 + $0x1e8] sm:$0xff] }
  0xc5   : > { %2877 = vmatprep.subr.mxu0 %v3488_v0 }
  0xc6   : > { %2878 = vmatpush3.msra.mxu0 %v954_v14  ;;  %v1284_v14 = vld [vmem:[#allocation6 + $0x1e0] sm:$0xff] }
  0xc7   : > { %2929 = vmatprep.subr.mxu0 %v3488_v0 }
 0x121   : > { %v497_v22 = vpop.f32.mrf.mxu0 }
 0x122   : > { %v577_v24 = vpop.f32.mrf.mxu1 }
 0x123   : > { %v2635_v25 = vpop.f32.mrf.mxu0  ;;  %v578_v46 = vadd.f32 %v577_v24, %v497_v22  ;;  %v1283_v22 = vld [vmem:[#allocation6 + $0x1d8] sm:$0xff]  ;;  %v1176_v24 = vld [vmem:[#allocation6 + $0x170] sm:$0xff] }
 0x124   : > { %v2676_v17 = vpop.f32.mrf.mxu1 }
 0x125   : > { %v1282_v17 = vld [vmem:[#allocation6 + $0x1d0] sm:$0xff] }
 0x138   : > { %v502_v26 = vpop.f32.mrf.mxu0 }
 0x13a   : > { %v2638_v27 = vpop.f32.mrf.mxu0 }
 0x13b   : > { %v582_v28 = vpop.f32.mrf.mxu1  ;;  %v1175_v27 = vld [vmem:[#allocation6 + $0x168] sm:$0xff] }
 0x13c   : > { %v583_v48 = vadd.f32 %v582_v28, %v502_v26 }
 0x13d   : > { %v2679_v29 = vpop.f32.mrf.mxu1 }
 0x13e   : > { %v507_v30 = vpop.f32.mrf.mxu0 }
 0x140   : > { %v2641_v31 = vpop.f32.mrf.mxu0 }
 0x141   : > { %v587_v32 = vpop.f32.mrf.mxu1  ;;  %v1174_v31 = vld [vmem:[#allocation6 + $0x160] sm:$0xff] }
 0x142   : > { %v588_v53 = vadd.f32 %v587_v32, %v507_v30  ;;  %v1281_v30 = vld [vmem:[#allocation6 + $0x1c8] sm:$0xff]  ;;  %v1280_v32 = vld [vmem:[#allocation6 + $0x1c0] sm:$0xff] }
 0x143   : > { %v2682_v33 = vpop.f32.mrf.mxu1 }
 0x145   : > { %v685_v34 = vpop.f32.mrf.mxu0 }
 0x146   : > { %v699_v47 = vadd.f32 %v685_v34, %v578_v46  ;;  %v1173_v34 = vld [vmem:[#allocation6 + $0x158] sm:$0xff]  ;;  %v1274_v46 = vld [vmem:[#allocation6 + $0x190] sm:$0xff] }
 0x147   : > { %v2717_v35 = vpop.f32.mrf.mxu0 }
 0x148   : > { %v796_v36 = vpop.f32.mrf.mxu1  ;;  %v1279_v35 = vld [vmem:[#allocation6 + $0x1b8] sm:$0xff] }
 0x149   : > { %v810_v49 = vadd.f32 %v796_v36, %v699_v47  ;;  %v1172_v36 = vld [vmem:[#allocation6 + $0x150] sm:$0xff]  ;;  %v1167_v47 = vld [vmem:[#allocation6 + $0x128] sm:$0xff] }
 0x14a   : > { %v2758_v37 = vpop.f32.mrf.mxu1 }
 0x14b   : > { %v690_v38 = vpop.f32.mrf.mxu0 }
 0x14c   : > { %v801_v39 = vpop.f32.mrf.mxu1  ;;  %v700_v50 = vadd.f32 %v690_v38, %v583_v48  ;;  %v1278_v38 = vld [vmem:[#allocation6 + $0x1b0] sm:$0xff]  ;;  %v1273_v48 = vld [vmem:[#allocation6 + $0x188] sm:$0xff] }
 0x14d   : > { %v2720_v40 = vpop.f32.mrf.mxu0 }
 0x14e   : > { %v2761_v41 = vpop.f32.mrf.mxu1  ;;  %v811_v20 = vadd.f32 %v801_v39, %v700_v50  ;;  %v1171_v39 = vld [vmem:[#allocation6 + $0x148] sm:$0xff] }
 0x14f   : > { %v695_v42 = vpop.f32.mrf.mxu0  ;;  %v1277_v40 = vld [vmem:[#allocation6 + $0x1a8] sm:$0xff]  ;;  %v1170_v41 = vld [vmem:[#allocation6 + $0x140] sm:$0xff] }
 0x150   : > { %v806_v43 = vpop.f32.mrf.mxu1  ;;  %v701_v55 = vadd.f32 %v695_v42, %v588_v53  ;;  %v1276_v42 = vld [vmem:[#allocation6 + $0x1a0] sm:$0xff] }
 0x151   : > { %v2723_v44 = vpop.f32.mrf.mxu0 }
 0x152   : > { %v2764_v45 = vpop.f32.mrf.mxu1  ;;  %v812_v62 = vadd.f32 %v806_v43, %v701_v55  ;;  %v1169_v43 = vld [vmem:[#allocation6 + $0x138] sm:$0xff] }
 0x153   : > { %v1275_v44 = vld [vmem:[#allocation6 + $0x198] sm:$0xff]  ;;  %v1168_v45 = vld [vmem:[#allocation6 + $0x130] sm:$0xff] }
 0x167   : > { %v907_v51 = vpop.f32.mrf.mxu0 }
 0x168   : > { %v921_v54 = vadd.f32 %v907_v51, %v810_v49  ;;  %v1166_v49 = vld [vmem:[#allocation6 + $0x120] sm:$0xff] }
 0x169   : > { %v2799_v18 = vpop.f32.mrf.mxu0  ;;  %v1272_v51 = vld [vmem:[#allocation6 + $0x180] sm:$0xff] }
 0x16a   : > { %v931_v56 = vadd.f32 %v2289_v52, %v921_v54  ;;  %v1164_v54 = vld [vmem:[#allocation6 + $0x110] sm:$0xff] }
 0x16b   : > { %v912_v57 = vpop.f32.mrf.mxu0 }
 0x16c   : > { %v934_v59 = vmax.f32 %v931_v56, 0.0  ;;  %v922_v60 = vadd.f32 %v912_v57, %v811_v20  ;;  %v1163_v20 = vld [vmem:[#allocation6 + $0x108] sm:$0xff]  ;;  %v1162_v57 = vld [vmem:[#allocation6 + $0x100] sm:$0xff] }
 0x16d   : > { %v2802_v61 = vpop.f32.mrf.mxu0 }
 0x16e   : > { %947 = vst [vmem:[#allocation2 + $0x2] sm:$0xff] %v934_v59  ;;  %v932_v63 = vadd.f32 %v2289_v52, %v922_v60  ;;  %v1397_v60 = vld [vmem:[#allocation6 + $0x278] sm:$0xff] }
 0x16f   : > { %v917_v1 = vpop.f32.mrf.mxu0 }
 0x170   : > { %v935_v3 = vmax.f32 %v932_v63, 0.0  ;;  %v923_v4 = vadd.f32 %v917_v1, %v812_v62  ;;  %v1396_v1 = vld [vmem:[#allocation6 + $0x270] sm:$0xff] }
 0x171   : > { %v2805_v5 = vpop.f32.mrf.mxu0 }
 0x172   : > { %948 = vst [vmem:[#allocation2 + $0xa] sm:$0xff] %v935_v3  ;;  %v933_v6 = vadd.f32 %v2289_v52, %v923_v4  ;;  %v1165_v52 = vld [vmem:[#allocation6 + $0x118] sm:$0xff]  ;;  %v1395_v3 = vld [vmem:[#allocation6 + $0x268] sm:$0xff] }
 0x174   : > { %v936_v7 = vmax.f32 %v933_v6, 0.0  ;;  %v1394_v6 = vld [vmem:[#allocation6 + $0x260] sm:$0xff] }
 0x175   : > { %v3859_v9 = vld [vmem:[#allocation2] sm:$0xff] }
 0x176   : > { %v946_v10 = vsel %vm943_vm5, %v936_v7, 0.0  ;;  %2880 = vmatmul.mubr.f32.vlgmr.msra.gmra.mxu0 %v3859_v9  ;;  %v991_v15 = vrot.slane %v3859_v9, 1  ;;  %v1288_v23 = vrot.slane %v3859_v9, 3  ;;  %v1178_v59 = vrot.slane %v3859_v9, 2  ;;  %v1393_v7 = vld [vmem:[#allocation6 + $0x258] sm:$0xff] }
 0x177   : > { %949 = vst [vmem:[#allocation2 + $0x12] sm:$0xff] %v946_v10  ;;  %2930 = vmatpush3.msra.mxu0 %v1287_v8  ;;  %2882 = vmatprep.mubr.msk.f32.mxu0 %vm3489_vm0, %v3488_v0  ;;  %v1392_v10 = vld [vmem:[#allocation6 + $0x250] sm:$0xff] }
 0x178   : > { %2931 = vmatprep.subr.mxu0 %v3488_v0 }
 0x179   : > { %2932 = vmatpush3.msra.mxu0 %v1286_v11  ;;  %v3867_v13 = vld [vmem:[#allocation2 + $0x8] sm:$0xff] }
 0x17a   : > { %2933 = vmatprep.subr.mxu0 %v3488_v0  ;;  %2883 = vmatmul.mubr.f32.gmra.mxu0 %v3867_v13  ;;  %v992_v16 = vrot.slane %v3867_v13, 1  ;;  %v1289_v50 = vrot.slane %v3867_v13, 3  ;;  %v1179_v55 = vrot.slane %v3867_v13, 2  ;;  %v1391_v11 = vld [vmem:[#allocation6 + $0x248] sm:$0xff] }
 0x17b   : > { %2934 = vmatpush3.msra.mxu0 %v1285_v12  ;;  %2885 = vmatprep.mubr.msk.f32.mxu0 %vm3489_vm0, %v3488_v0  ;;  %v1390_v12 = vld [vmem:[#allocation6 + $0x240] sm:$0xff] }
 0x17c   : > { %2935 = vmatprep.subr.mxu0 %v3488_v0  ;;  %v993_v21 = vsel %vm420_vm2, %v991_v15, %v992_v16  ;;  %v1290_v53 = vsel %vm719_vm4, %v1288_v23, %v1289_v50  ;;  %v1180_v61 = vsel %vm608_vm3, %v1178_v59, %v1179_v55  ;;  %v1388_v15 = vld [vmem:[#allocation6 + $0x230] sm:$0xff] }
 0x17d   : > { %2936 = vmatpush3.msra.mxu0 %v1284_v14  ;;  %2839 = vmatmul.mubr.f32.vlgmr.msra.gmra.mxu1 %v993_v21  ;;  %v1389_v14 = vld [vmem:[#allocation6 + $0x238] sm:$0xff]  ;;  %v1516_v23 = vld [vmem:[#allocation8 + $0x10] sm:$0xff] }
 0x17e   : > { %2889 = vmatpush3.msra.mxu1 %v1177_v19  ;;  %2937 = vmatprep.subr.mxu0 %v3488_v0  ;;  %v3878_v25 = vld [vmem:[#allocation2 + $0x10] sm:$0xff]  ;;  %v3886_v29 = vld [vmem:[#allocation2 + $0x18] sm:$0xf]  ;;  %v1386_v19 = vld [vmem:[#allocation6 + $0x220] sm:$0xff] }
 0x17f   : > { %2890 = vmatprep.subr.mxu1 %v3488_v0  ;;  %2938 = vmatpush3.msra.mxu0 %v1283_v22  ;;  %v994_v26 = vrot.slane %v3878_v25, 1  ;;  %v996_v33 = vrot.slane %v3886_v29, 1  ;;  %v1291_v18 = vrot.slane %v3878_v25, 3  ;;  %v1293_v58 = vrot.slane %v3886_v29, 3  ;;  %v1385_v21 = vld [vmem:[#allocation6 + $0x218] sm:$0xff]  ;;  %v1384_v22 = vld [vmem:[#allocation6 + $0x210] sm:$0xff] }
 0x180   : > { %2886 = vmatmul.mubr.f32.gmra.mxu0 %v3878_v25  ;;  %2891 = vmatpush3.msra.mxu1 %v1176_v24  ;;  %v1181_v62 = vrot.slane %v3878_v25, 2  ;;  %v1183_v5 = vrot.slane %v3886_v29, 2  ;;  %v1383_v24 = vld [vmem:[#allocation6 + $0x208] sm:$0xff] }
 0x181   : > { %2939 = vmatprep.subr.mxu0 %v3488_v0  ;;  %2892 = vmatprep.subr.mxu1 %v3488_v0  ;;  %v995_v28 = vsel %vm420_vm2, %v992_v16, %v994_v26  ;;  %v997_v37 = vsel %vm420_vm2, %v994_v26, %v996_v33  ;;  %v1292_v56 = vsel %vm719_vm4, %v1289_v50, %v1291_v18  ;;  %v1387_v16 = vld [vmem:[#allocation6 + $0x228] sm:$0xff]  ;;  %v1382_v26 = vld [vmem:[#allocation6 + $0x200] sm:$0xff]  ;;  %v1546_v33 = vld [vmem:[#allocation8 + $0xf8] sm:$0xff] }
 0x182   : > { %2940 = vmatpush3.msra.mxu0 %v1282_v17  ;;  %2841 = vmatprep.mubr.msk.f32.mxu1 %vm3489_vm0, %v3488_v0  ;;  %v1294_v63 = vsel %vm719_vm4, %v1291_v18, %v1293_v58  ;;  %v1182_v4 = vsel %vm608_vm3, %v1179_v55, %v1181_v62  ;;  %v1184_v8 = vsel %vm608_vm3, %v1181_v62, %v1183_v5  ;;  %v1399_v17 = vrot.slane %v3867_v13, 4  ;;  %v1538_v50 = vld [vmem:[#allocation8 + $0xb8] sm:$0xff]  ;;  %v1535_v18 = vld [vmem:[#allocation8 + $0xa0] sm:$0xff] }
 0x183   : > { %2893 = vmatpush3.msra.mxu1 %v1175_v27  ;;  %2941 = vmatprep.subr.mxu0 %v3488_v0  ;;  %v1398_v27 = vrot.slane %v3859_v9, 4  ;;  %v1534_v55 = vld [vmem:[#allocation8 + $0x98] sm:$0xff]  ;;  %v1531_v58 = vld [vmem:[#allocation8 + $0x80] sm:$0xff] }
 0x184   : > { %2842 = vmatmul.mubr.f32.gmra.mxu1 %v995_v28  ;;  %2894 = vmatprep.subr.mxu1 %v3488_v0 }
 0x185   : > { %2942 = vmatpush3.msra.mxu0 %v1281_v30  ;;  %2895 = vmatpush3.msra.mxu1 %v1174_v31  ;;  %v1400_v28 = vsel %vm830_vm1, %v1398_v27, %v1399_v17  ;;  %v1401_v30 = vrot.slane %v3878_v25, 4  ;;  %v1403_v31 = vrot.slane %v3886_v29, 4  ;;  %v1529_v25 = vld [vmem:[#allocation8 + $0x78] sm:$0xff]  ;;  %v1544_v29 = vld [vmem:[#allocation8 + $0xe8] sm:$0xff] }
 0x186   : > { %2943 = vmatprep.subr.mxu0 %v3488_v0  ;;  %2896 = vmatprep.subr.mxu1 %v3488_v0 }
 0x187   : > { %2944 = vmatpush3.msra.mxu0 %v1280_v32  ;;  %2844 = vmatprep.mubr.msk.f32.mxu1 %vm3489_vm0, %v3488_v0  ;;  %v1402_v13 = vsel %vm830_vm1, %v1399_v17, %v1401_v30  ;;  %v1404_v9 = vsel %vm830_vm1, %v1401_v30, %v1403_v31  ;;  %v1528_v32 = vld [vmem:[#allocation8 + $0x70] sm:$0xff] }
 0x188   : > { %2897 = vmatpush3.msra.mxu1 %v1173_v34  ;;  %2945 = vmatprep.subr.mxu0 %v3488_v0  ;;  %v1527_v34 = vld [vmem:[#allocation8 + $0x68] sm:$0xff] }
 0x189   : > { %2845 = vmatmul.mubr.f32.gmra.mxu1 %v997_v37  ;;  %2898 = vmatprep.subr.mxu1 %v3488_v0  ;;  %v1543_v37 = vld [vmem:[#allocation8 + $0xe0] sm:$0xff] }
 0x18a   : > { %2946 = vmatpush3.msra.mxu0 %v1279_v35  ;;  %2899 = vmatpush3.msra.mxu1 %v1172_v36  ;;  %v1545_v35 = vld [vmem:[#allocation8 + $0xf0] sm:$0xff]  ;;  %v1526_v36 = vld [vmem:[#allocation8 + $0x60] sm:$0xff] }
 0x18b   : > { %2947 = vmatprep.subr.mxu0 %v3488_v0  ;;  %2900 = vmatprep.subr.mxu1 %v3488_v0 }
 0x18c   : > { %2948 = vmatpush3.msra.mxu0 %v1278_v38  ;;  %2901 = vmatpush3.msra.mxu1 %v1171_v39  ;;  %v1525_v38 = vld [vmem:[#allocation8 + $0x58] sm:$0xff] }
 0x18d   : > { %2949 = vmatprep.subr.mxu0 %v3488_v0  ;;  %2902 = vmatprep.subr.mxu1 %v3488_v0  ;;  %v1542_v39 = vld [vmem:[#allocation8 + $0xd8] sm:$0xff] }
 0x18e   : > { %2950 = vmatpush3.msra.mxu0 %v1277_v40  ;;  %2903 = vmatpush3.msra.mxu1 %v1170_v41  ;;  %v1524_v40 = vld [vmem:[#allocation8 + $0x50] sm:$0xff]  ;;  %v1523_v41 = vld [vmem:[#allocation8 + $0x48] sm:$0xff] }
 0x18f   : > { %2951 = vmatprep.subr.mxu0 %v3488_v0  ;;  %2904 = vmatprep.subr.mxu1 %v3488_v0 }
 0x190   : > { %2952 = vmatpush3.msra.mxu0 %v1276_v42  ;;  %2905 = vmatpush3.msra.mxu1 %v1169_v43  ;;  %v1522_v42 = vld [vmem:[#allocation8 + $0x40] sm:$0xff]  ;;  %v1521_v43 = vld [vmem:[#allocation8 + $0x38] sm:$0xff] }
 0x191   : > { %2953 = vmatprep.subr.mxu0 %v3488_v0  ;;  %2906 = vmatprep.subr.mxu1 %v3488_v0 }
 0x192   : > { %2954 = vmatpush3.msra.mxu0 %v1275_v44  ;;  %2907 = vmatpush3.msra.mxu1 %v1168_v45  ;;  %v1541_v44 = vld [vmem:[#allocation8 + $0xd0] sm:$0xff] }
 0x193   : > { %2955 = vmatprep.subr.mxu0 %v3488_v0  ;;  %2908 = vmatprep.subr.mxu1 %v3488_v0  ;;  %v1520_v45 = vld [vmem:[#allocation8 + $0x30] sm:$0xff] }
 0x194   : > { %2956 = vmatpush3.msra.mxu0 %v1274_v46  ;;  %2909 = vmatpush3.msra.mxu1 %v1167_v47  ;;  %v1540_v46 = vld [vmem:[#allocation8 + $0xc8] sm:$0xff] }
 0x195   : > { %2957 = vmatprep.subr.mxu0 %v3488_v0  ;;  %2910 = vmatprep.subr.mxu1 %v3488_v0  ;;  %v1519_v47 = vld [vmem:[#allocation8 + $0x28] sm:$0xff] }
 0x196   : > { %2958 = vmatpush3.msra.mxu0 %v1273_v48  ;;  %2911 = vmatpush3.msra.mxu1 %v1166_v49  ;;  %v1539_v48 = vld [vmem:[#allocation8 + $0xc0] sm:$0xff] }
 0x197   : > { %2959 = vmatprep.subr.mxu0 %v3488_v0  ;;  %2912 = vmatprep.subr.mxu1 %v3488_v0  ;;  %v1518_v49 = vld [vmem:[#allocation8 + $0x20] sm:$0xff] }
 0x198   : > { %2960 = vmatpush3.msra.mxu0 %v1272_v51  ;;  %2961 = vmatprep.mubr.msk.f32.mxu0 %vm3489_vm0, %v3488_v0  ;;  %v1517_v51 = vld [vmem:[#allocation8 + $0x18] sm:$0xff] }
 0x199   : > { %2913 = vmatpush3.msra.mxu1 %v1165_v52  ;;  %2962 = vmatmul.mubr.f32.vlgmr.msra.gmra.mxu0 %v1290_v53  ;;  %v1537_v52 = vld [vmem:[#allocation8 + $0xb0] sm:$0xff]  ;;  %v1536_v53 = vld [vmem:[#allocation8 + $0xa8] sm:$0xff] }
 0x19a   : > { %2914 = vmatprep.subr.mxu1 %v3488_v0  ;;  %2964 = vmatprep.mubr.msk.f32.mxu0 %vm3489_vm0, %v3488_v0 }
 0x19b   : > { %2915 = vmatpush3.msra.mxu1 %v1164_v54  ;;  %2920 = vmatprep.mubr.msk.f32.mxu1 %vm3489_vm0, %v3488_v0  ;;  %v1515_v54 = vld [vmem:[#allocation8 + $0x8] sm:$0xff] }
 0x19c   : > { %2916 = vmatprep.subr.mxu1 %v3488_v0  ;;  %3011 = vmatprep.subr.mxu0 %v3488_v0 }
 0x19d   : > { %2917 = vmatpush3.msra.mxu1 %v1163_v20  ;;  %2965 = vmatmul.mubr.f32.gmra.mxu0 %v1292_v56  ;;  %v1514_v20 = vld [vmem:[#allocation8] sm:$0xff]  ;;  %v1533_v56 = vld [vmem:[#allocation8 + $0x90] sm:$0xff] }
 0x19e   : > { %2918 = vmatprep.subr.mxu1 %v3488_v0  ;;  %2967 = vmatprep.mubr.msk.f32.mxu0 %vm3489_vm0, %v3488_v0 }
 0x19f   : > { %2919 = vmatpush3.msra.mxu1 %v1162_v57  ;;  %3012 = vmatpush3.msra.mxu0 %v1546_v33  ;;  %v1532_v57 = vld [vmem:[#allocation8 + $0x88] sm:$0xff] }
 0x1a0   : > { %2921 = vmatmul.mubr.f32.vlgmr.msra.gmra.mxu1 %v1180_v61  ;;  %2970 = vmatprep.subr.mxu1 %v3488_v0 }
 0x1a1   : > { %2968 = vmatmul.mubr.f32.gmra.mxu0 %v1294_v63  ;;  %2971 = vmatpush3.msra.mxu1 %v1397_v60 }
 0x1a2   : > { %2972 = vmatprep.subr.mxu1 %v3488_v0  ;;  %2923 = vmatprep.mubr.msk.f32.mxu1 %vm3489_vm0, %v3488_v0 }
 0x1a3   : > { %2973 = vmatpush3.msra.mxu1 %v1396_v1  ;;  %3043 = vmatprep.mubr.msk.f32.mxu0 %vm3489_vm0, %v3488_v0 }
 0x1a4   : > { %2924 = vmatmul.mubr.f32.gmra.mxu1 %v1182_v4  ;;  %2974 = vmatprep.subr.mxu1 %v3488_v0 }
 0x1a5   : > { %2975 = vmatpush3.msra.mxu1 %v1395_v3  ;;  %2926 = vmatprep.mubr.msk.f32.mxu1 %vm3489_vm0, %v3488_v0 }
 0x1a6   : > { %2976 = vmatprep.subr.mxu1 %v3488_v0  ;;  %3013 = vmatprep.subr.mxu0 %v3488_v0 }
 0x1a7   : > { %2977 = vmatpush3.msra.mxu1 %v1394_v6  ;;  %3014 = vmatpush3.msra.mxu0 %v1545_v35 }
 0x1a8   : > { %2927 = vmatmul.mubr.f32.gmra.mxu1 %v1184_v8  ;;  %2978 = vmatprep.subr.mxu1 %v3488_v0 }
 0x1a9   : > { %2979 = vmatpush3.msra.mxu1 %v1393_v7  ;;  %3002 = vmatprep.mubr.msk.f32.mxu1 %vm3489_vm0, %v3488_v0 }
 0x1aa   : > { %2980 = vmatprep.subr.mxu1 %v3488_v0  ;;  %3015 = vmatprep.subr.mxu0 %v3488_v0 }
 0x1ab   : > { %2981 = vmatpush3.msra.mxu1 %v1392_v10  ;;  %3016 = vmatpush3.msra.mxu0 %v1544_v29 }
 0x1ac   : > { %2982 = vmatprep.subr.mxu1 %v3488_v0  ;;  %3017 = vmatprep.subr.mxu0 %v3488_v0 }
 0x1ad   : > { %2983 = vmatpush3.msra.mxu1 %v1391_v11  ;;  %3018 = vmatpush3.msra.mxu0 %v1543_v37 }
 0x1ae   : > { %2984 = vmatprep.subr.mxu1 %v3488_v0  ;;  %3019 = vmatprep.subr.mxu0 %v3488_v0 }
 0x1af   : > { %2985 = vmatpush3.msra.mxu1 %v1390_v12  ;;  %3020 = vmatpush3.msra.mxu0 %v1542_v39 }
 0x1b0   : > { %2986 = vmatprep.subr.mxu1 %v3488_v0  ;;  %3021 = vmatprep.subr.mxu0 %v3488_v0 }
 0x1b1   : > { %2987 = vmatpush3.msra.mxu1 %v1389_v14  ;;  %3022 = vmatpush3.msra.mxu0 %v1541_v44 }
 0x1b2   : > { %2988 = vmatprep.subr.mxu1 %v3488_v0  ;;  %3023 = vmatprep.subr.mxu0 %v3488_v0 }
 0x1b3   : > { %2989 = vmatpush3.msra.mxu1 %v1388_v15  ;;  %3024 = vmatpush3.msra.mxu0 %v1540_v46 }
 0x1b4   : > { %2990 = vmatprep.subr.mxu1 %v3488_v0  ;;  %3025 = vmatprep.subr.mxu0 %v3488_v0 }
 0x1b5   : > { %2991 = vmatpush3.msra.mxu1 %v1387_v16  ;;  %3026 = vmatpush3.msra.mxu0 %v1539_v48 }
 0x1b6   : > { %2992 = vmatprep.subr.mxu1 %v3488_v0  ;;  %3027 = vmatprep.subr.mxu0 %v3488_v0 }
 0x1b7   : > { %2993 = vmatpush3.msra.mxu1 %v1386_v19  ;;  %3028 = vmatpush3.msra.mxu0 %v1538_v50 }
 0x1b8   : > { %2994 = vmatprep.subr.mxu1 %v3488_v0  ;;  %3029 = vmatprep.subr.mxu0 %v3488_v0 }
 0x1b9   : > { %2995 = vmatpush3.msra.mxu1 %v1385_v21  ;;  %3030 = vmatpush3.msra.mxu0 %v1537_v52  ;;  %v1846_v52 = vld [vmem:[#allocation8 + $0x1f0] sm:$0xff] }
 0x1ba   : > { %2996 = vmatprep.subr.mxu1 %v3488_v0  ;;  %3031 = vmatprep.subr.mxu0 %v3488_v0 }
 0x1bb   : > { %2997 = vmatpush3.msra.mxu1 %v1384_v22  ;;  %3032 = vmatpush3.msra.mxu0 %v1536_v53 }
 0x1bc   : > { %2998 = vmatprep.subr.mxu1 %v3488_v0  ;;  %3033 = vmatprep.subr.mxu0 %v3488_v0 }
 0x1bd   : > { %2999 = vmatpush3.msra.mxu1 %v1383_v24  ;;  %3034 = vmatpush3.msra.mxu0 %v1535_v18 }
 0x1be   : > { %3000 = vmatprep.subr.mxu1 %v3488_v0  ;;  %3035 = vmatprep.subr.mxu0 %v3488_v0 }
 0x1bf   : > { %3001 = vmatpush3.msra.mxu1 %v1382_v26  ;;  %3036 = vmatpush3.msra.mxu0 %v1534_v55 }
 0x1c0   : > { %3003 = vmatmul.mubr.f32.vlgmr.msra.gmra.mxu1 %v1400_v28  ;;  %3052 = vmatprep.subr.mxu1 %v3488_v0 }
 0x1c1   : > { %3005 = vmatprep.mubr.msk.f32.mxu1 %vm3489_vm0, %v3488_v0  ;;  %3053 = vmatpush3.msra.mxu1 %v1529_v25  ;;  %v2290_v25 = vld [vmem:[%s4265_s4] ss:$0 sm:$0xff] }
 0x1c2   : > { %3054 = vmatprep.subr.mxu1 %v3488_v0  ;;  %3037 = vmatprep.subr.mxu0 %v3488_v0 }
 0x1c3   : > { %3055 = vmatpush3.msra.mxu1 %v1528_v32  ;;  %3038 = vmatpush3.msra.mxu0 %v1533_v56  ;;  %v1737_v56 = vld [vmem:[#allocation8 + $0x178] sm:$0xff] }
 0x1c4   : > { %3006 = vmatmul.mubr.f32.gmra.mxu1 %v1402_v13  ;;  %3056 = vmatprep.subr.mxu1 %v3488_v0 }
 0x1c5   : > { %3008 = vmatprep.mubr.msk.f32.mxu1 %vm3489_vm0, %v3488_v0  ;;  %3057 = vmatpush3.msra.mxu1 %v1527_v34 }
 0x1c6   : > { %3058 = vmatprep.subr.mxu1 %v3488_v0  ;;  %3039 = vmatprep.subr.mxu0 %v3488_v0 }
 0x1c7   : > { %3059 = vmatpush3.msra.mxu1 %v1526_v36  ;;  %3040 = vmatpush3.msra.mxu0 %v1532_v57 }
 0x1c8   : > { %3009 = vmatmul.mubr.f32.gmra.mxu1 %v1404_v9  ;;  %3060 = vmatprep.subr.mxu1 %v3488_v0 }
 0x1c9   : > { %3084 = vmatprep.mubr.msk.f32.mxu1 %vm3489_vm0, %v3488_v0  ;;  %3061 = vmatpush3.msra.mxu1 %v1525_v38 }
 0x1ca   : > { %3062 = vmatprep.subr.mxu1 %v3488_v0  ;;  %3041 = vmatprep.subr.mxu0 %v3488_v0 }
 0x1cb   : > { %3063 = vmatpush3.msra.mxu1 %v1524_v40  ;;  %3042 = vmatpush3.msra.mxu0 %v1531_v58  ;;  %v1843_v58 = vld [vmem:[#allocation8 + $0x1d8] sm:$0xff] }
 0x1cc   : > { %3064 = vmatprep.subr.mxu1 %v3488_v0  ;;  %3093 = vmatprep.subr.mxu0 %v3488_v0 }
 0x1cd   : > { %3065 = vmatpush3.msra.mxu1 %v1523_v41 }
 0x1ce   : > { %3066 = vmatprep.subr.mxu1 %v3488_v0 }
 0x1cf   : > { %3067 = vmatpush3.msra.mxu1 %v1522_v42 }
 0x1d0   : > { %3068 = vmatprep.subr.mxu1 %v3488_v0 }
 0x1d1   : > { %3069 = vmatpush3.msra.mxu1 %v1521_v43 }
 0x1d2   : > { %3070 = vmatprep.subr.mxu1 %v3488_v0 }
 0x1d3   : > { %3071 = vmatpush3.msra.mxu1 %v1520_v45 }
 0x1d4   : > { %3072 = vmatprep.subr.mxu1 %v3488_v0 }
 0x1d5   : > { %3073 = vmatpush3.msra.mxu1 %v1519_v47 }
 0x1d6   : > { %3074 = vmatprep.subr.mxu1 %v3488_v0 }
 0x1d7   : > { %3075 = vmatpush3.msra.mxu1 %v1518_v49  ;;  %v1847_v49 = vld [vmem:[#allocation8 + $0x1f8] sm:$0xff] }
 0x1d8   : > { %3076 = vmatprep.subr.mxu1 %v3488_v0 }
 0x1d9   : > { %3077 = vmatpush3.msra.mxu1 %v1517_v51 }
 0x1da   : > { %3078 = vmatprep.subr.mxu1 %v3488_v0 }
 0x1db   : > { %3079 = vmatpush3.msra.mxu1 %v1516_v23  ;;  %v1845_v23 = vld [vmem:[#allocation8 + $0x1e8] sm:$0xff] }
 0x1dc   : > { %3080 = vmatprep.subr.mxu1 %v3488_v0 }
 0x1dd   : > { %3081 = vmatpush3.msra.mxu1 %v1515_v54 }
 0x1de   : > { %3082 = vmatprep.subr.mxu1 %v3488_v0 }
 0x1df   : > { %3083 = vmatpush3.msra.mxu1 %v1514_v20 }
 0x1e0   : > { %3134 = vmatprep.subr.mxu1 %v3488_v0 }
 0x236   : > { %v1147_v59 = vpop.f32.mrf.mxu0 }
 0x238   : > { %v2881_v60 = vpop.f32.mrf.mxu0 }
 0x239   : > { %v1736_v60 = vld [vmem:[#allocation8 + $0x170] sm:$0xff] }
 0x23a   : > { %v1152_v61 = vpop.f32.mrf.mxu0 }
 0x23c   : > { %v2884_v62 = vpop.f32.mrf.mxu0 }
 0x23d   : > { %v1067_v63 = vpop.f32.mrf.mxu1  ;;  %v1842_v62 = vld [vmem:[#allocation8 + $0x1d0] sm:$0xff] }
 0x23e   : > { %v1148_v27 = vadd.f32 %v1147_v59, %v1067_v63 }
 0x23f   : > { %v2840_v1 = vpop.f32.mrf.mxu1 }
 0x240   : > { %v1157_v3 = vpop.f32.mrf.mxu0  ;;  %v1735_v1 = vld [vmem:[#allocation8 + $0x168] sm:$0xff] }
 0x242   : > { %v2887_v4 = vpop.f32.mrf.mxu0 }
 0x244   : > { %v1072_v5 = vpop.f32.mrf.mxu1 }
 0x245   : > { %v1153_v30 = vadd.f32 %v1152_v61, %v1072_v5 }
 0x246   : > { %v2843_v6 = vpop.f32.mrf.mxu1 }
 0x247   : > { %v1841_v6 = vld [vmem:[#allocation8 + $0x1c8] sm:$0xff] }
 0x249   : > { %v1077_v7 = vpop.f32.mrf.mxu1 }
 0x24a   : > { %v1158_v32 = vadd.f32 %v1157_v3, %v1077_v7  ;;  %v1734_v7 = vld [vmem:[#allocation8 + $0x160] sm:$0xff] }
 0x24b   : > { %v2846_v8 = vpop.f32.mrf.mxu1 }
 0x259   : > { %v1364_v10 = vpop.f32.mrf.mxu0 }
 0x25b   : > { %v2963_v11 = vpop.f32.mrf.mxu0 }
 0x25d   : > { %v1369_v12 = vpop.f32.mrf.mxu0 }
 0x25f   : > { %v2966_v14 = vpop.f32.mrf.mxu0 }
 0x260   : > { %v1254_v15 = vpop.f32.mrf.mxu1  ;;  %v1839_v14 = vld [vmem:[#allocation8 + $0x1b8] sm:$0xff] }
 0x261   : > { %v1374_v16 = vpop.f32.mrf.mxu0  ;;  %v1268_v28 = vadd.f32 %v1254_v15, %v1148_v27  ;;  %v1732_v15 = vld [vmem:[#allocation8 + $0x150] sm:$0xff]  ;;  %v1835_v27 = vld [vmem:[#allocation8 + $0x198] sm:$0xff] }
 0x262   : > { %v2922_v19 = vpop.f32.mrf.mxu1 }
 0x263   : > { %v2969_v21 = vpop.f32.mrf.mxu0  ;;  %v1378_v31 = vadd.f32 %v1364_v10, %v1268_v28  ;;  %v1840_v10 = vld [vmem:[#allocation8 + $0x1c0] sm:$0xff]  ;;  %v1838_v19 = vld [vmem:[#allocation8 + $0x1b0] sm:$0xff] }
 0x264   : > { %v1259_v22 = vpop.f32.mrf.mxu1  ;;  %v1731_v21 = vld [vmem:[#allocation8 + $0x148] sm:$0xff]  ;;  %v1728_v28 = vld [vmem:[#allocation8 + $0x130] sm:$0xff] }
 0x265   : > { %v1269_v13 = vadd.f32 %v1259_v22, %v1153_v30  ;;  %v1837_v22 = vld [vmem:[#allocation8 + $0x1a8] sm:$0xff]  ;;  %v1834_v30 = vld [vmem:[#allocation8 + $0x190] sm:$0xff] }
 0x266   : > { %v2925_v24 = vpop.f32.mrf.mxu1 }
 0x267   : > { %v1379_v36 = vadd.f32 %v1369_v12, %v1269_v13  ;;  %v1733_v12 = vld [vmem:[#allocation8 + $0x158] sm:$0xff]  ;;  %v1730_v24 = vld [vmem:[#allocation8 + $0x140] sm:$0xff]  ;;  %v1727_v13 = vld [vmem:[#allocation8 + $0x128] sm:$0xff] }
 0x268   : > { %v1264_v17 = vpop.f32.mrf.mxu1 }
 0x269   : > { %v1270_v35 = vadd.f32 %v1264_v17, %v1158_v32  ;;  %v1836_v17 = vld [vmem:[#allocation8 + $0x1a0] sm:$0xff] }
 0x26a   : > { %v2928_v26 = vpop.f32.mrf.mxu1  ;;  %v1832_v32 = vld [vmem:[#allocation8 + $0x180] sm:$0xff] }
 0x26b   : > { %v1380_v42 = vadd.f32 %v1374_v16, %v1270_v35  ;;  %v1729_v26 = vld [vmem:[#allocation8 + $0x138] sm:$0xff] }
 0x280   : > { %v1474_v9 = vpop.f32.mrf.mxu1 }
 0x281   : > { %v1488_v33 = vadd.f32 %v1474_v9, %v1378_v31  ;;  %v1833_v31 = vld [vmem:[#allocation8 + $0x188] sm:$0xff]  ;;  %v1726_v9 = vld [vmem:[#allocation8 + $0x120] sm:$0xff] }
 0x282   : > { %v3004_v34 = vpop.f32.mrf.mxu1 }
 0x283   : > { %v1498_v29 = vadd.f32 %v2290_v25, %v1488_v33  ;;  %v1725_v33 = vld [vmem:[#allocation8 + $0x118] sm:$0xff] }
 0x284   : > { %v1479_v37 = vpop.f32.mrf.mxu1 }
 0x285   : > { %v1501_v38 = vmax.f32 %v1498_v29, 0.0  ;;  %v1489_v39 = vadd.f32 %v1479_v37, %v1379_v36  ;;  %v1724_v29 = vld [vmem:[#allocation8 + $0x110] sm:$0xff]  ;;  %v1723_v37 = vld [vmem:[#allocation8 + $0x108] sm:$0xff] }
 0x286   : > { %v3007_v40 = vpop.f32.mrf.mxu1 }
 0x287   : > { %1507 = vst [vmem:[#allocation2 + $0x2] sm:$0xff] %v1501_v38  ;;  %v1499_v41 = vadd.f32 %v2290_v25, %v1489_v39  ;;  %v1722_v40 = vld [vmem:[#allocation8 + $0x100] sm:$0xff] }
 0x288   : > { %v1484_v43 = vpop.f32.mrf.mxu1 }
 0x289   : > { %v1502_v44 = vmax.f32 %v1499_v41, 0.0  ;;  %v1490_v45 = vadd.f32 %v1484_v43, %v1380_v42  ;;  %v1957_v43 = vld [vmem:[#allocation8 + $0x278] sm:$0xff] }
 0x28a   : > { %v3010_v46 = vpop.f32.mrf.mxu1 }
 0x28b   : > { %1508 = vst [vmem:[#allocation2 + $0xa] sm:$0xff] %v1502_v44  ;;  %v1500_v47 = vadd.f32 %v2290_v25, %v1490_v45 }
 0x28d   : > { %v1503_v48 = vmax.f32 %v1500_v47, 0.0  ;;  %v1956_v47 = vld [vmem:[#allocation8 + $0x270] sm:$0xff] }
 0x28e   : > { %v4013_v50 = vld [vmem:[#allocation2] sm:$0xff] }
 0x28f   : > { %v1506_v51 = vsel %vm943_vm5, %v1503_v48, 0.0  ;;  %3085 = vmatmul.mubr.f32.vlgmr.msra.gmra.mxu1 %v4013_v50  ;;  %v1551_v54 = vrot.slane %v4013_v50, 1  ;;  %v1958_v20 = vrot.slane %v4013_v50, 4  ;;  %v1848_v34 = vrot.slane %v4013_v50, 3  ;;  %v1955_v48 = vld [vmem:[#allocation8 + $0x268] sm:$0xff] }
 0x290   : > { %1509 = vst [vmem:[#allocation2 + $0x12] sm:$0xff] %v1506_v51  ;;  %3135 = vmatpush3.msra.mxu1 %v1847_v49  ;;  %3087 = vmatprep.mubr.msk.f32.mxu1 %vm3489_vm0, %v3488_v0  ;;  %v1738_v42 = vrot.slane %v4013_v50, 2  ;;  %v1954_v51 = vld [vmem:[#allocation8 + $0x260] sm:$0xff] }
 0x291   : > { %3136 = vmatprep.subr.mxu1 %v3488_v0 }
 0x292   : > { %3137 = vmatpush3.msra.mxu1 %v1846_v52  ;;  %v4021_v53 = vld [vmem:[#allocation2 + $0x8] sm:$0xff]  ;;  %v1953_v52 = vld [vmem:[#allocation8 + $0x258] sm:$0xff] }
 0x293   : > { %3138 = vmatprep.subr.mxu1 %v3488_v0  ;;  %3088 = vmatmul.mubr.f32.gmra.mxu1 %v4021_v53  ;;  %v1552_v18 = vrot.slane %v4021_v53, 1  ;;  %v1959_v55 = vrot.slane %v4021_v53, 4  ;;  %v1849_v25 = vrot.slane %v4021_v53, 3  ;;  %v1739_v38 = vrot.slane %v4021_v53, 2  ;;  %v1952_v53 = vld [vmem:[#allocation8 + $0x250] sm:$0xff] }
 0x294   : > { %3139 = vmatpush3.msra.mxu1 %v1845_v23  ;;  %3090 = vmatprep.mubr.msk.f32.mxu1 %vm3489_vm0, %v3488_v0 }
 0x295   : > { %3140 = vmatprep.subr.mxu1 %v3488_v0  ;;  %v1553_v57 = vsel %vm420_vm2, %v1551_v54, %v1552_v18  ;;  %v4034_v59 = vsel %vm830_vm1, %v1958_v20, %v1959_v55  ;;  %v1850_v35 = vsel %vm719_vm4, %v1848_v34, %v1849_v25  ;;  %v1740_v44 = vsel %vm608_vm3, %v1738_v42, %v1739_v38  ;;  %v1950_v54 = vld [vmem:[#allocation8 + $0x240] sm:$0xff]  ;;  %v1948_v20 = vld [vmem:[#allocation8 + $0x230] sm:$0xff] }
 0x296   : > { %3141 = vmatpush3.msra.mxu1 %v1844_v2  ;;  %3044 = vmatmul.mubr.f32.vlgmr.msra.gmra.mxu0 %v1553_v57  ;;  %v1951_v2 = vld [vmem:[#allocation8 + $0x248] sm:$0xff]  ;;  %v1945_v57 = vld [vmem:[#allocation8 + $0x218] sm:$0xff] }
 0x297   : > { %3094 = vmatpush3.msra.mxu0 %v1737_v56  ;;  %3142 = vmatprep.subr.mxu1 %v3488_v0  ;;  %v4037_v61 = vld [vmem:[#allocation2 + $0x10] sm:$0xff]  ;;  %v4046_v5 = vld [vmem:[#allocation2 + $0x18] sm:$0xf]  ;;  %v1946_v56 = vld [vmem:[#allocation8 + $0x220] sm:$0xff] }
 0x298   : > { %3095 = vmatprep.subr.mxu0 %v3488_v0  ;;  %3143 = vmatpush3.msra.mxu1 %v1843_v58  ;;  %v1554_v63 = vrot.slane %v4037_v61, 1  ;;  %v1961_v3 = vrot.slane %v4037_v61, 4  ;;  %v1556_v11 = vrot.slane %v4046_v5, 1  ;;  %v1851_v36 = vrot.slane %v4037_v61, 3  ;;  %v1944_v58 = vld [vmem:[#allocation8 + $0x210] sm:$0xff] }
 0x299   : > { %3091 = vmatmul.mubr.f32.gmra.mxu1 %v4037_v61  ;;  %3096 = vmatpush3.msra.mxu0 %v1736_v60  ;;  %v1853_v41 = vrot.slane %v4046_v5, 3  ;;  %v1741_v45 = vrot.slane %v4037_v61, 2  ;;  %v1743_v50 = vrot.slane %v4046_v5, 2  ;;  %v1943_v60 = vld [vmem:[#allocation8 + $0x208] sm:$0xff]  ;;  %v2076_v61 = vld [vmem:[%s4268_s7 + $0x60] sm:$0xff] }
 0x29a   : > { %3144 = vmatprep.subr.mxu1 %v3488_v0  ;;  %3097 = vmatprep.subr.mxu0 %v3488_v0  ;;  %v1555_v4 = vsel %vm420_vm2, %v1552_v18, %v1554_v63  ;;  %v4054_v8 = vsel %vm830_vm1, %v1959_v55, %v1961_v3  ;;  %v1557_v16 = vsel %vm420_vm2, %v1554_v63, %v1556_v11  ;;  %v1949_v18 = vld [vmem:[#allocation8 + $0x238] sm:$0xff]  ;;  %v1947_v55 = vld [vmem:[#allocation8 + $0x228] sm:$0xff]  ;;  %v1963_v63 = vrot.slane %v4046_v5, 4  ;;  %v2070_v11 = vld [vmem:[%s4268_s7 + $0x30] sm:$0xff] }
 0x29b   : > { %3145 = vmatpush3.msra.mxu1 %v1842_v62  ;;  %3046 = vmatprep.mubr.msk.f32.mxu0 %vm3489_vm0, %v3488_v0  ;;  %v1852_v39 = vsel %vm719_vm4, %v1849_v25, %v1851_v36  ;;  %v1854_v46 = vsel %vm719_vm4, %v1851_v36, %v1853_v41  ;;  %v1742_v49 = vsel %vm608_vm3, %v1739_v38, %v1741_v45  ;;  %v1942_v62 = vld [vmem:[#allocation8 + $0x200] sm:$0xff]  ;;  %v2077_v5 = vld [vmem:[%s4268_s7 + $0x68] sm:$0xff] }
 0x29c   : > { %3098 = vmatpush3.msra.mxu0 %v1735_v1  ;;  %3146 = vmatprep.subr.mxu1 %v3488_v0  ;;  %v1744_v23 = vsel %vm608_vm3, %v1741_v45, %v1743_v50  ;;  %v1964_v1 = vsel %vm830_vm1, %v1961_v3, %v1963_v63  ;;  %v2075_v3 = vld [vmem:[%s4268_s7 + $0x58] sm:$0xff]  ;;  %v2291_v50 = vld [vmem:[%s4267_s6] ss:$0 sm:$0xff] }
 0x29d   : > { %3047 = vmatmul.mubr.f32.gmra.mxu0 %v1555_v4  ;;  %3099 = vmatprep.subr.mxu0 %v3488_v0  ;;  %v2079_v4 = vld [vmem:[%s4268_s7 + $0x78] sm:$0xff] }
 0x29e   : > { %3147 = vmatpush3.msra.mxu1 %v1841_v6  ;;  %3100 = vmatpush3.msra.mxu0 %v1734_v7  ;;  %v2074_v6 = vld [vmem:[%s4268_s7 + $0x50] sm:$0xff]  ;;  %v2073_v7 = vld [vmem:[%s4268_s7 + $0x48] sm:$0xff] }
 0x29f   : > { %3148 = vmatprep.subr.mxu1 %v3488_v0  ;;  %3101 = vmatprep.subr.mxu0 %v3488_v0 }
 0x2a0   : > { %3149 = vmatpush3.msra.mxu1 %v1840_v10  ;;  %3049 = vmatprep.mubr.msk.f32.mxu0 %vm3489_vm0, %v3488_v0  ;;  %v2071_v10 = vld [vmem:[%s4268_s7 + $0x38] sm:$0xff] }
 0x2a1   : > { %3102 = vmatpush3.msra.mxu0 %v1733_v12  ;;  %3150 = vmatprep.subr.mxu1 %v3488_v0  ;;  %v2069_v12 = vld [vmem:[%s4268_s7 + $0x28] sm:$0xff] }
 0x2a2   : > { %3050 = vmatmul.mubr.f32.gmra.mxu0 %v1557_v16  ;;  %3103 = vmatprep.subr.mxu0 %v3488_v0  ;;  %v2066_v16 = vld [vmem:[%s4268_s7 + $0x10] sm:$0xff] }
 0x2a3   : > { %3151 = vmatpush3.msra.mxu1 %v1839_v14  ;;  %3104 = vmatpush3.msra.mxu0 %v1732_v15  ;;  %v2068_v14 = vld [vmem:[%s4268_s7 + $0x20] sm:$0xff]  ;;  %v2067_v15 = vld [vmem:[%s4268_s7 + $0x18] sm:$0xff] }
 0x2a4   : > { %3152 = vmatprep.subr.mxu1 %v3488_v0  ;;  %3105 = vmatprep.subr.mxu0 %v3488_v0 }
 0x2a5   : > { %3153 = vmatpush3.msra.mxu1 %v1838_v19  ;;  %3106 = vmatpush3.msra.mxu0 %v1731_v21  ;;  %v2065_v19 = vld [vmem:[%s4268_s7 + $0x8] sm:$0xff]  ;;  %v2064_v21 = vld [vmem:[%s4268_s7] sm:$0xff] }
 0x2a6   : > { %3154 = vmatprep.subr.mxu1 %v3488_v0  ;;  %3107 = vmatprep.subr.mxu0 %v3488_v0 }
 0x2a7   : > { %3155 = vmatpush3.msra.mxu1 %v1837_v22  ;;  %3108 = vmatpush3.msra.mxu0 %v1730_v24 }
 0x2a8   : > { %3156 = vmatprep.subr.mxu1 %v3488_v0  ;;  %3109 = vmatprep.subr.mxu0 %v3488_v0 }
 0x2a9   : > { %3157 = vmatpush3.msra.mxu1 %v1836_v17  ;;  %3110 = vmatpush3.msra.mxu0 %v1729_v26 }
 0x2aa   : > { %3158 = vmatprep.subr.mxu1 %v3488_v0  ;;  %3111 = vmatprep.subr.mxu0 %v3488_v0 }
 0x2ab   : > { %3159 = vmatpush3.msra.mxu1 %v1835_v27  ;;  %3112 = vmatpush3.msra.mxu0 %v1728_v28 }
 0x2ac   : > { %3160 = vmatprep.subr.mxu1 %v3488_v0  ;;  %3113 = vmatprep.subr.mxu0 %v3488_v0 }
 0x2ad   : > { %3161 = vmatpush3.msra.mxu1 %v1834_v30  ;;  %3114 = vmatpush3.msra.mxu0 %v1727_v13 }
 0x2ae   : > { %3162 = vmatprep.subr.mxu1 %v3488_v0  ;;  %3115 = vmatprep.subr.mxu0 %v3488_v0 }
 0x2af   : > { %3163 = vmatpush3.msra.mxu1 %v1833_v31  ;;  %3116 = vmatpush3.msra.mxu0 %v1726_v9 }
 0x2b0   : > { %3164 = vmatprep.subr.mxu1 %v3488_v0  ;;  %3117 = vmatprep.subr.mxu0 %v3488_v0 }
 0x2b1   : > { %3165 = vmatpush3.msra.mxu1 %v1832_v32  ;;  %3166 = vmatprep.mubr.msk.f32.mxu1 %vm3489_vm0, %v3488_v0 }
 0x2b2   : > { %3118 = vmatpush3.msra.mxu0 %v1725_v33  ;;  %3167 = vmatmul.mubr.f32.vlgmr.msra.gmra.mxu1 %v1850_v35 }
 0x2b3   : > { %3119 = vmatprep.subr.mxu0 %v3488_v0  ;;  %3169 = vmatprep.mubr.msk.f32.mxu1 %vm3489_vm0, %v3488_v0 }
 0x2b4   : > { %3120 = vmatpush3.msra.mxu0 %v1724_v29  ;;  %3125 = vmatprep.mubr.msk.f32.mxu0 %vm3489_vm0, %v3488_v0 }
 0x2b5   : > { %3121 = vmatprep.subr.mxu0 %v3488_v0  ;;  %3216 = vmatprep.subr.mxu1 %v3488_v0 }
 0x2b6   : > { %3122 = vmatpush3.msra.mxu0 %v1723_v37  ;;  %3170 = vmatmul.mubr.f32.gmra.mxu1 %v1852_v39 }
 0x2b7   : > { %3123 = vmatprep.subr.mxu0 %v3488_v0  ;;  %3172 = vmatprep.mubr.msk.f32.mxu1 %vm3489_vm0, %v3488_v0 }
 0x2b8   : > { %3124 = vmatpush3.msra.mxu0 %v1722_v40  ;;  %3217 = vmatpush3.msra.mxu1 %v2079_v4 }
 0x2b9   : > { %3126 = vmatmul.mubr.f32.vlgmr.msra.gmra.mxu0 %v1740_v44  ;;  %3175 = vmatprep.subr.mxu0 %v3488_v0 }
 0x2ba   : > { %3173 = vmatmul.mubr.f32.gmra.mxu1 %v1854_v46  ;;  %3176 = vmatpush3.msra.mxu0 %v1957_v43 }
 0x2bb   : > { %3177 = vmatprep.subr.mxu0 %v3488_v0  ;;  %3128 = vmatprep.mubr.msk.f32.mxu0 %vm3489_vm0, %v3488_v0 }
 0x2bc   : > { %3178 = vmatpush3.msra.mxu0 %v1956_v47  ;;  %3248 = vmatprep.mubr.msk.f32.mxu1 %vm3489_vm0, %v3488_v0 }
 0x2bd   : > { %3129 = vmatmul.mubr.f32.gmra.mxu0 %v1742_v49  ;;  %3179 = vmatprep.subr.mxu0 %v3488_v0 }
 0x2be   : > { %3180 = vmatpush3.msra.mxu0 %v1955_v48  ;;  %3131 = vmatprep.mubr.msk.f32.mxu0 %vm3489_vm0, %v3488_v0 }
 0x2bf   : > { %3181 = vmatprep.subr.mxu0 %v3488_v0  ;;  %3218 = vmatprep.subr.mxu1 %v3488_v0 }
 0x2c0   : > { %3182 = vmatpush3.msra.mxu0 %v1954_v51 }
 0x2c1   : > { %3132 = vmatmul.mubr.f32.gmra.mxu0 %v1744_v23  ;;  %3183 = vmatprep.subr.mxu0 %v3488_v0 }
 0x2c2   : > { %3184 = vmatpush3.msra.mxu0 %v1953_v52  ;;  %3207 = vmatprep.mubr.msk.f32.mxu0 %vm3489_vm0, %v3488_v0 }
 0x2c3   : > { %3185 = vmatprep.subr.mxu0 %v3488_v0 }
 0x2c4   : > { %3186 = vmatpush3.msra.mxu0 %v1952_v53 }
 0x2c5   : > { %3187 = vmatprep.subr.mxu0 %v3488_v0 }
 0x2c6   : > { %3188 = vmatpush3.msra.mxu0 %v1951_v2 }
 0x2c7   : > { %3189 = vmatprep.subr.mxu0 %v3488_v0 }
 0x2c8   : > { %3190 = vmatpush3.msra.mxu0 %v1950_v54 }
 0x2c9   : > { %3191 = vmatprep.subr.mxu0 %v3488_v0 }
 0x2ca   : > { %3192 = vmatpush3.msra.mxu0 %v1949_v18 }
 0x2cb   : > { %3193 = vmatprep.subr.mxu0 %v3488_v0 }
 0x2cc   : > { %3194 = vmatpush3.msra.mxu0 %v1948_v20 }
 0x2cd   : > { %3195 = vmatprep.subr.mxu0 %v3488_v0 }
 0x2ce   : > { %3196 = vmatpush3.msra.mxu0 %v1947_v55 }
 0x2cf   : > { %3197 = vmatprep.subr.mxu0 %v3488_v0 }
 0x2d0   : > { %3198 = vmatpush3.msra.mxu0 %v1946_v56 }
 0x2d1   : > { %3199 = vmatprep.subr.mxu0 %v3488_v0 }
 0x2d2   : > { %3200 = vmatpush3.msra.mxu0 %v1945_v57 }
 0x2d3   : > { %3201 = vmatprep.subr.mxu0 %v3488_v0 }
 0x2d4   : > { %3202 = vmatpush3.msra.mxu0 %v1944_v58 }
 0x2d5   : > { %3203 = vmatprep.subr.mxu0 %v3488_v0 }
 0x2d6   : > { %3204 = vmatpush3.msra.mxu0 %v1943_v60 }
 0x2d7   : > { %3205 = vmatprep.subr.mxu0 %v3488_v0 }
 0x2d8   : > { %3206 = vmatpush3.msra.mxu0 %v1942_v62 }
 0x2d9   : > { %3208 = vmatmul.mubr.f32.vlgmr.msra.gmra.mxu0 %v4034_v59  ;;  %v2078_v59 = vld [vmem:[%s4268_s7 + $0x70] sm:$0xff] }
 0x2da   : > { %3210 = vmatprep.mubr.msk.f32.mxu0 %vm3489_vm0, %v3488_v0  ;;  %3219 = vmatpush3.msra.mxu1 %v2078_v59 }
 0x2db   : > { %3220 = vmatprep.subr.mxu1 %v3488_v0 }
 0x2dc   : > { %3221 = vmatpush3.msra.mxu1 %v2077_v5  ;;  %v2292_v5 = vld [vmem:[%s4269_s8] ss:$0 sm:$0xff] }
 0x2dd   : > { %3211 = vmatmul.mubr.f32.gmra.mxu0 %v4054_v8  ;;  %3222 = vmatprep.subr.mxu1 %v3488_v0  ;;  %v2072_v8 = vld [vmem:[%s4268_s7 + $0x40] sm:$0xff] }
 0x2de   : > { %3213 = vmatprep.mubr.msk.f32.mxu0 %vm3489_vm0, %v3488_v0  ;;  %3223 = vmatpush3.msra.mxu1 %v2076_v61 }
 0x2df   : > { %3224 = vmatprep.subr.mxu1 %v3488_v0 }
 0x2e0   : > { %3225 = vmatpush3.msra.mxu1 %v2075_v3 }
 0x2e1   : > { %3214 = vmatmul.mubr.f32.gmra.mxu0 %v1964_v1  ;;  %3226 = vmatprep.subr.mxu1 %v3488_v0 }
 0x2e2   : > { %3227 = vmatpush3.msra.mxu1 %v2074_v6 }
 0x2e3   : > { %3228 = vmatprep.subr.mxu1 %v3488_v0 }
 0x2e4   : > { %3229 = vmatpush3.msra.mxu1 %v2073_v7 }
 0x2e5   : > { %3230 = vmatprep.subr.mxu1 %v3488_v0 }
 0x2e6   : > { %3231 = vmatpush3.msra.mxu1 %v2072_v8 }
 0x2e7   : > { %3232 = vmatprep.subr.mxu1 %v3488_v0 }
 0x2e8   : > { %3233 = vmatpush3.msra.mxu1 %v2071_v10 }
 0x2e9   : > { %3234 = vmatprep.subr.mxu1 %v3488_v0 }
 0x2ea   : > { %3235 = vmatpush3.msra.mxu1 %v2070_v11 }
 0x2eb   : > { %3236 = vmatprep.subr.mxu1 %v3488_v0 }
 0x2ec   : > { %3237 = vmatpush3.msra.mxu1 %v2069_v12 }
 0x2ed   : > { %3238 = vmatprep.subr.mxu1 %v3488_v0 }
 0x2ee   : > { %3239 = vmatpush3.msra.mxu1 %v2068_v14 }
 0x2ef   : > { %3240 = vmatprep.subr.mxu1 %v3488_v0 }
 0x2f0   : > { %3241 = vmatpush3.msra.mxu1 %v2067_v15 }
 0x2f1   : > { %3242 = vmatprep.subr.mxu1 %v3488_v0 }
 0x2f2   : > { %3243 = vmatpush3.msra.mxu1 %v2066_v16 }
 0x2f3   : > { %3244 = vmatprep.subr.mxu1 %v3488_v0 }
 0x2f4   : > { %3245 = vmatpush3.msra.mxu1 %v2065_v19 }
 0x2f5   : > { %3246 = vmatprep.subr.mxu1 %v3488_v0 }
 0x2f6   : > { %3247 = vmatpush3.msra.mxu1 %v2064_v21 }
 0x34f   : > { %v1707_v22 = vpop.f32.mrf.mxu1 }
 0x351   : > { %v3086_v24 = vpop.f32.mrf.mxu1 }
 0x353   : > { %v1712_v17 = vpop.f32.mrf.mxu1 }
 0x355   : > { %v3089_v26 = vpop.f32.mrf.mxu1 }
 0x356   : > { %v1627_v27 = vpop.f32.mrf.mxu0 }
 0x357   : > { %v1708_v44 = vadd.f32 %v1707_v22, %v1627_v27 }
 0x358   : > { %v3045_v28 = vpop.f32.mrf.mxu0 }
 0x359   : > { %v1717_v30 = vpop.f32.mrf.mxu1 }
 0x35b   : > { %v3092_v13 = vpop.f32.mrf.mxu1 }
 0x35d   : > { %v1632_v31 = vpop.f32.mrf.mxu0 }
 0x35e   : > { %v1713_v46 = vadd.f32 %v1712_v17, %v1632_v31 }
 0x35f   : > { %v3048_v9 = vpop.f32.mrf.mxu0 }
 0x362   : > { %v1637_v25 = vpop.f32.mrf.mxu0 }
 0x363   : > { %v1718_v51 = vadd.f32 %v1717_v30, %v1637_v25 }
 0x364   : > { %v3051_v32 = vpop.f32.mrf.mxu0 }
 0x372   : > { %v1924_v33 = vpop.f32.mrf.mxu1 }
 0x374   : > { %v3168_v34 = vpop.f32.mrf.mxu1 }
 0x376   : > { %v1929_v35 = vpop.f32.mrf.mxu1 }
 0x378   : > { %v3171_v29 = vpop.f32.mrf.mxu1 }
 0x379   : > { %v1814_v36 = vpop.f32.mrf.mxu0 }
 0x37a   : > { %v1934_v37 = vpop.f32.mrf.mxu1  ;;  %v1828_v45 = vadd.f32 %v1814_v36, %v1708_v44 }
 0x37b   : > { %v3127_v38 = vpop.f32.mrf.mxu0 }
 0x37c   : > { %v3174_v39 = vpop.f32.mrf.mxu1  ;;  %v1938_v48 = vadd.f32 %v1924_v33, %v1828_v45 }
 0x37d   : > { %v1819_v40 = vpop.f32.mrf.mxu0 }
 0x37e   : > { %v1829_v47 = vadd.f32 %v1819_v40, %v1713_v46 }
 0x37f   : > { %v3130_v41 = vpop.f32.mrf.mxu0 }
 0x380   : > { %v1939_v54 = vadd.f32 %v1929_v35, %v1829_v47 }
 0x381   : > { %v1824_v42 = vpop.f32.mrf.mxu0 }
 0x382   : > { %v1830_v53 = vadd.f32 %v1824_v42, %v1718_v51 }
 0x383   : > { %v3133_v43 = vpop.f32.mrf.mxu0 }
 0x384   : > { %v1940_v58 = vadd.f32 %v1934_v37, %v1830_v53 }
 0x399   : > { %v2034_v49 = vpop.f32.mrf.mxu0 }
 0x39a   : > { %v2048_v52 = vadd.f32 %v2034_v49, %v1938_v48 }
 0x39b   : > { %v3209_v23 = vpop.f32.mrf.mxu0 }
 0x39c   : > { %v2058_v2 = vadd.f32 %v2291_v50, %v2048_v52 }
 0x39d   : > { %v2039_v18 = vpop.f32.mrf.mxu0 }
 0x39e   : > { %v2061_v20 = vmax.f32 %v2058_v2, 0.0  ;;  %v2049_v55 = vadd.f32 %v2039_v18, %v1939_v54 }
 0x39f   : > { %v3212_v56 = vpop.f32.mrf.mxu0 }
 0x3a0   : > { %v2059_v57 = vadd.f32 %v2291_v50, %v2049_v55  ;;  %3249 = vmatmul.mubr.f32.vlgmr.msra.gmra.mxu1 %v2061_v20 }
 0x3a1   : > { %v2044_v60 = vpop.f32.mrf.mxu0  ;;  %3251 = vmatprep.mubr.msk.f32.mxu1 %vm3489_vm0, %v3488_v0 }
 0x3a2   : > { %v2062_v62 = vmax.f32 %v2059_v57, 0.0  ;;  %v2050_v63 = vadd.f32 %v2044_v60, %v1940_v58 }
 0x3a3   : > { %v3215_v1 = vpop.f32.mrf.mxu0 }
 0x3a4   : > { %v2060_v4 = vadd.f32 %v2291_v50, %v2050_v63  ;;  %3252 = vmatmul.mubr.f32.gmra.mxu1 %v2062_v62 }
 0x3a5   : > { %3254 = vmatprep.mubr.msk.f32.mxu1 %vm3489_vm0, %v3488_v0 }
 0x3a6   : > { %v2063_v59 = vmax.f32 %v2060_v4, 0.0 }
 0x3a8   : > { %3255 = vmatmul.mubr.f32.gmra.mxu1 %v2063_v59 }
 0x460   : > { %v2153_v61 = vpop.f32.mrf.mxu1 }
 0x461   : > { %v2154_v3 = vadd.f32 %v2292_v5, %v2153_v61 }
 0x462   : > { %v3250_v6 = vpop.f32.mrf.mxu1 }
 0x463   : > { %2167 = vst [vmem:[%s369_s22] sm:$0xff] %v2154_v3 }
 0x464   : > { %v2158_v7 = vpop.f32.mrf.mxu1 }
 0x465   : > { %v2159_v8 = vadd.f32 %v2292_v5, %v2158_v7 }
 0x466   : > { %v3253_v10 = vpop.f32.mrf.mxu1 }
 0x467   : > { %2168 = vst [vmem:[%s369_s22 + $0x8] sm:$0xff] %v2159_v8 }
 0x468   : > { %v2163_v0 = vpop.f32.mrf.mxu1 }
 0x469   : > { %v2164_v11 = vadd.f32 %v2292_v5, %v2163_v0 }
 0x46a   : > { %v3256_v12 = vpop.f32.mrf.mxu1 }
 0x46b   : > { %2169 = vst [vmem:[%s369_s22 + $0x10] sm:$0xff] %v2164_v11 }
 0x46c   : > { %3426 = shalt.err (!%p3423_p0)
}
 0x46d   : > { %s3427_s27 = scalar_lea.hbm %s4219_s14, 384  ;;  %s3431_s21 = scalar_lea.hbm %s4270_s9, 1536 }
 0x46e   : > { %p3428_p6 = scmp.ne.s32.totalorder %s4219_s14, %s3427_s27  ;;  %p3432_p1 = scmp.lt.s32.totalorder %s4219_s14, %s4270_s9 }
 0x46f   : > { %p3433_p5 = scmp.lt.s32.totalorder %s3431_s21, %s3427_s27 }
 0x470   : > { %p3429_p9 = pnand %p3428_p6, %p4281_p3 }
 0x471   : > { %p3434_p10 = por %p3433_p5, %p3432_p1 }
 0x472   : > { %p3430_p13 = pneg %p3429_p9 }
 0x474   : > { %p3435_p12 = pnand %p3434_p10, %p3430_p13 }
 0x476   : > { %3438 = shalt.err (!%p3435_p12)
}
 0x477   : > { %s3491_s13 = smov 128   ;;  %s3492_s25 = smov 8  }
 0x478   : > { %3271 = dma.vmem_to_hbm [thread:$0]  (%p4281_p3), %s4214_s24, 384, %s4219_s14, %s4221_s16, %s3491_s13, %s3491_s13, %s3492_s25  }
 0x479 PF: > { %p3293_p2 = scmp.ge.s32.totalorder %s3481_s12, 2  ;;  %s2199_s29 = sand.u32 1, %s3469_s30  }
 0x47a   : > { %p4282_p4 = scmp.ne.s32.totalorder %s4274_s20, 0  ;;  %s2200_s23 = scalar_lea.sflag [#allocation5], %s2199_s29 }
 0x47c   : > { %p3284_p7 = pnand %p3293_p2, %p4282_p4 }
 0x47e   : > { %p3285_p8 = pneg %p3284_p7 }
 0x480   : > { %3464 = dma.done.wait (%p3285_p8), %s2200_s23, 384  }
 0x481   : > { %3466 = vsyncadd (%p3285_p8), %s2200_s23, 4294966912  ;;  %p21_p11 = scmp.ge.s32.totalorder %s3568_s15, 6   ;;  %s4283_s30 = smov %s3473_s10 }
 0x482   : > { %s4284_s10 = smov %s3477_s11  ;;  %s4285_s11 = smov %s3579_s18 }
 0x483   : > { %s4286_s12 = smov %s3568_s15  ;;  %23 = sbr.rel (!%p21_p11) target bundleno = 5 (0x5), region = 116 }
 0x488   :  { %2205 = vsyncpa [#allocation4], 1 }
 0x489   :  { %2207 = vsyncpa [#allocation4 + $0x1], 1 }
 0x48a   :  { %2208 = vsyncpa [#allocation7], 1 }
 0x48b   :  { %2209 = vsyncpa [#allocation5], 1 }
 0x48c   :  { %2211 = vsyncpa [#allocation5 + $0x1], 1 }

</bundles_post_ra>
